<compile_context>
chip_gen: v7x
topology: tpu7x:2x2x1
jax: 0.10.0
libtpu: 0.0.40
codegen_flags: <defaults>
</compile_context>

<pallas_src>
import functools

import jax
import jax.numpy as jnp
from jax.experimental import pallas as pl
from jax.experimental.pallas import tpu as pltpu

EMBEDDING_DIM = 32
H1 = 512
H2 = 256
OUT = 1
NEG_SLOPE = 0.2


def _round_up(n, m):
    return ((n + m - 1) // m) * m


def _leaky_relu(x, neg_slope):
    return jnp.where(x > 0, x, neg_slope * x)


def discriminator_kernel(x_ref, w1_ref, b1_ref, w2_ref, b2_ref, w3r_ref, b3_ref, o_ref):
    """Fused 3-layer MLP + sigmoid on one batch tile.

    Weights are resident across the grid (constant index_map).  Matmuls for the
    512/256-wide layers run on the MXU with bf16 operands and f32 accumulation;
    the 256->1 layer is a VPU multiply + lane reduction; sigmoid uses the EUP
    (exp + approximate reciprocal).
    """
    # Layer 1: Linear(E, 512) + LeakyReLU(0.2)  [Dropout(0.2) -> identity in eval]
    x = x_ref[...].astype(jnp.bfloat16)
    h1 = jnp.dot(x, w1_ref[...], preferred_element_type=jnp.float32) + b1_ref[...]
    h1 = _leaky_relu(h1, NEG_SLOPE)

    # Layer 2: Linear(512, 256) + LeakyReLU(0.2)  [Dropout(0.2) -> identity in eval]
    h2 = jnp.dot(h1.astype(jnp.bfloat16), w2_ref[...],
                 preferred_element_type=jnp.float32) + b2_ref[...]
    h2 = _leaky_relu(h2, NEG_SLOPE)

    # Layer 3: Linear(256, 1) + Sigmoid.  N=1 matmul would waste the MXU, so do
    # the dot product as an elementwise multiply + lane reduce (VPU/XLU slots).
    h3 = jnp.sum(h2 * w3r_ref[...], axis=-1, keepdims=True) + b3_ref[...]
    o_ref[...] = pl.reciprocal(1.0 + jnp.exp(-h3), approx=True).astype(o_ref.dtype)


@functools.partial(jax.jit, static_argnames=("block_b",))
def discriminator_forward(x, params, *, block_b=256):
    """x: [B, E] float32 -> [B, 1] float32 (probabilities)."""
    w1, b1, w2, b2, w3, b3 = params
    B, E = x.shape
    h1 = w1.shape[1]
    h2 = w2.shape[1]

    # Tile the batch in MXU-row-aligned chunks; don't use a tile bigger than the
    # (128-rounded) batch itself.  Pad the batch to a multiple of the tile.
    block_b = max(8, min(block_b, max(128, _round_up(B, 128))))
    bp = _round_up(B, block_b)
    if bp != B:
        x = jnp.pad(x, ((0, bp - B), (0, 0)))

    # bf16 weights halve the weight DMA and feed the MXU its native dtype.
    w1_bf = w1.astype(jnp.bfloat16)
    w2_bf = w2.astype(jnp.bfloat16)
    # Layer-3 weight presented as a (1, H2) row so the kernel can broadcast it
    # along lanes (transpose done in the wrapper: layout plumbing, not compute).
    w3_row = jnp.transpose(w3)  # (1, H2), f32

    grid = (bp // block_b,)

    out = pl.pallas_call(
        discriminator_kernel,
        out_shape=jax.ShapeDtypeStruct((bp, OUT), jnp.float32),
        grid_spec=pl.GridSpec(
            grid=grid,
            in_specs=[
                pl.BlockSpec((block_b, E), lambda i: (i, 0)),   # x tile
                pl.BlockSpec((E, h1), lambda i: (0, 0)),        # W1 (bf16)
                pl.BlockSpec((1, h1), lambda i: (0, 0)),        # b1
                pl.BlockSpec((h1, h2), lambda i: (0, 0)),       # W2 (bf16)
                pl.BlockSpec((1, h2), lambda i: (0, 0)),        # b2
                pl.BlockSpec((1, h2), lambda i: (0, 0)),        # W3 as a row
                pl.BlockSpec((1, OUT), lambda i: (0, 0)),       # b3
            ],
            out_specs=pl.BlockSpec((block_b, OUT), lambda i: (i, 0)),
        ),
        compiler_params=pltpu.CompilerParams(
            dimension_semantics=("parallel",),
        ),
    )(x, w1_bf, b1, w2_bf, b2, w3_row, b3)

    return out[:B]


def init_params(key, embedding_dim):
    """Deterministic init mimicking nn.Linear's uniform(-1/sqrt(fan_in), 1/sqrt(fan_in)).

    Weights stored as [in_features, out_features] (transposed vs. PyTorch)."""
    ks = jax.random.split(key, 6)

    def lin(kw, kb, fan_in, fan_out):
        bound = 1.0 / jnp.sqrt(fan_in)
        w = jax.random.uniform(kw, (fan_in, fan_out), jnp.float32, -bound, bound)
        b = jax.random.uniform(kb, (1, fan_out), jnp.float32, -bound, bound)
        return w, b

    w1, b1 = lin(ks[0], ks[1], embedding_dim, H1)
    w2, b2 = lin(ks[2], ks[3], H1, H2)
    w3, b3 = lin(ks[4], ks[5], H2, OUT)
    return (w1, b1, w2, b2, w3, b3)


def reference_forward(x, params):
    """Pure-JAX f32 reference of the same forward pass (eval-mode dropout)."""
    w1, b1, w2, b2, w3, b3 = params
    h = _leaky_relu(x @ w1 + b1, NEG_SLOPE)
    h = _leaky_relu(h @ w2 + b2, NEG_SLOPE)
    return jax.nn.sigmoid(h @ w3 + b3)


if __name__ == "__main__":
    key = jax.random.PRNGKey(0)
    k_x, k_p = jax.random.split(key)

    B = 16
    x = jax.random.normal(k_x, (B, EMBEDDING_DIM), dtype=jnp.float32)
    params = init_params(k_p, EMBEDDING_DIM)

    out = discriminator_forward(x, params)
    out = jax.block_until_ready(out)

    ref = reference_forward(x, params)
    assert out.shape == (B, 1), out.shape
    # bf16 matmul operands + approx reciprocal -> relaxed tolerance vs f32 reference.
    assert jnp.allclose(out, ref, atol=2e-2, rtol=0.0), "mismatch vs reference"

    print("KERNEL_OK")
</pallas_src>

<mosaic_0001>
module attributes {stable_mosaic.version = 11 : i64} {
  func.func @discriminator_kernel(%arg0: i32, %arg1: memref<128x32xf32, #tpu.memory_space<vmem>>, %arg2: memref<32x512xbf16, #tpu.memory_space<vmem>>, %arg3: memref<1x512xf32, #tpu.memory_space<vmem>>, %arg4: memref<512x256xbf16, #tpu.memory_space<vmem>>, %arg5: memref<1x256xf32, #tpu.memory_space<vmem>>, %arg6: memref<1x256xf32, #tpu.memory_space<vmem>>, %arg7: memref<1x1xf32, #tpu.memory_space<vmem>>, %arg8: memref<128x1xf32, #tpu.memory_space<vmem>>) attributes {dimension_semantics = [#tpu.dimension_semantics<parallel>], iteration_bounds = array<i64: 1>, scalar_prefetch = 0 : i64, scratch_operands = 0 : i64, tpu.core_type = #tpu.core_type<tc>, window_params = [{transform_indices = @transform_0, window_bounds = array<i64: 128, 32>}, {pipeline_mode = #tpu.pipeline_mode<synchronous>, transform_indices = @transform_1, window_bounds = array<i64: 32, 512>}, {pipeline_mode = #tpu.pipeline_mode<synchronous>, transform_indices = @transform_2, window_bounds = array<i64: 1, 512>}, {pipeline_mode = #tpu.pipeline_mode<synchronous>, transform_indices = @transform_3, window_bounds = array<i64: 512, 256>}, {pipeline_mode = #tpu.pipeline_mode<synchronous>, transform_indices = @transform_4, window_bounds = array<i64: 1, 256>}, {pipeline_mode = #tpu.pipeline_mode<synchronous>, transform_indices = @transform_5, window_bounds = array<i64: 1, 256>}, {pipeline_mode = #tpu.pipeline_mode<synchronous>, transform_indices = @transform_6, window_bounds = array<i64: 1, 1>}, {transform_indices = @transform_7, window_bounds = array<i64: 128, 1>}]} {
    %c0 = arith.constant 0 : index
    %c0_0 = arith.constant 0 : index
    %0 = vector.load %arg1[%c0, %c0_0] : memref<128x32xf32, #tpu.memory_space<vmem>>, vector<128x32xf32>
    %1 = arith.truncf %0 : vector<128x32xf32> to vector<128x32xbf16>
    %c0_1 = arith.constant 0 : index
    %c0_2 = arith.constant 0 : index
    %2 = vector.load %arg2[%c0_1, %c0_2] : memref<32x512xbf16, #tpu.memory_space<vmem>>, vector<32x512xbf16>
    %cst = arith.constant dense<0.000000e+00> : vector<128x512xf32>
    %3 = tpu.matmul %1, %2, %cst {dimension_numbers = #tpu.dot_dimension_numbers<[1], [0], [0], [1], [0, 0, 1, 1], [], []>} : vector<128x32xbf16>, vector<32x512xbf16>, vector<128x512xf32> -> vector<128x512xf32>
    %c0_3 = arith.constant 0 : index
    %c0_4 = arith.constant 0 : index
    %4 = vector.load %arg3[%c0_3, %c0_4] : memref<1x512xf32, #tpu.memory_space<vmem>>, vector<1x512xf32>
    %5 = vector.broadcast %4 : vector<1x512xf32> to vector<128x512xf32>
    %6 = arith.addf %3, %5 : vector<128x512xf32>
    %cst_5 = arith.constant 0.000000e+00 : f32
    %7 = vector.broadcast %cst_5 : f32 to vector<128x512xf32>
    %8 = arith.cmpf ogt, %6, %7 : vector<128x512xf32>
    %cst_6 = arith.constant 2.000000e-01 : f32
    %9 = vector.broadcast %cst_6 : f32 to vector<128x512xf32>
    %10 = arith.mulf %9, %6 : vector<128x512xf32>
    %11 = arith.select %8, %6, %10 : vector<128x512xi1>, vector<128x512xf32>
    %12 = arith.truncf %11 : vector<128x512xf32> to vector<128x512xbf16>
    %c0_7 = arith.constant 0 : index
    %c0_8 = arith.constant 0 : index
    %13 = vector.load %arg4[%c0_7, %c0_8] : memref<512x256xbf16, #tpu.memory_space<vmem>>, vector<512x256xbf16>
    %cst_9 = arith.constant dense<0.000000e+00> : vector<128x256xf32>
    %14 = tpu.matmul %12, %13, %cst_9 {dimension_numbers = #tpu.dot_dimension_numbers<[1], [0], [0], [1], [0, 0, 1, 1], [], []>} : vector<128x512xbf16>, vector<512x256xbf16>, vector<128x256xf32> -> vector<128x256xf32>
    %c0_10 = arith.constant 0 : index
    %c0_11 = arith.constant 0 : index
    %15 = vector.load %arg5[%c0_10, %c0_11] : memref<1x256xf32, #tpu.memory_space<vmem>>, vector<1x256xf32>
    %16 = vector.broadcast %15 : vector<1x256xf32> to vector<128x256xf32>
    %17 = arith.addf %14, %16 : vector<128x256xf32>
    %cst_12 = arith.constant 0.000000e+00 : f32
    %18 = vector.broadcast %cst_12 : f32 to vector<128x256xf32>
    %19 = arith.cmpf ogt, %17, %18 : vector<128x256xf32>
    %cst_13 = arith.constant 2.000000e-01 : f32
    %20 = vector.broadcast %cst_13 : f32 to vector<128x256xf32>
    %21 = arith.mulf %20, %17 : vector<128x256xf32>
    %22 = arith.select %19, %17, %21 : vector<128x256xi1>, vector<128x256xf32>
    %c0_14 = arith.constant 0 : index
    %c0_15 = arith.constant 0 : index
    %23 = vector.load %arg6[%c0_14, %c0_15] : memref<1x256xf32, #tpu.memory_space<vmem>>, vector<1x256xf32>
    %24 = vector.broadcast %23 : vector<1x256xf32> to vector<128x256xf32>
    %25 = arith.mulf %22, %24 : vector<128x256xf32>
    %cst_16 = arith.constant dense<0.000000e+00> : vector<128xf32>
    %26 = vector.multi_reduction <add>, %25, %cst_16 [1] : vector<128x256xf32> to vector<128xf32>
    %27 = vector.shape_cast %26 : vector<128xf32> to vector<128x1xf32>
    %c0_17 = arith.constant 0 : index
    %c0_18 = arith.constant 0 : index
    %28 = vector.load %arg7[%c0_17, %c0_18] : memref<1x1xf32, #tpu.memory_space<vmem>>, vector<1x1xf32>
    %29 = vector.broadcast %28 : vector<1x1xf32> to vector<128x1xf32>
    %30 = arith.addf %27, %29 : vector<128x1xf32>
    %cst_19 = arith.constant 0.000000e+00 : f32
    %31 = vector.broadcast %cst_19 : f32 to vector<128x1xf32>
    %32 = arith.subf %31, %30 : vector<128x1xf32>
    %33 = math.exp %32 : vector<128x1xf32>
    %cst_20 = arith.constant 1.000000e+00 : f32
    %34 = vector.broadcast %cst_20 : f32 to vector<128x1xf32>
    %35 = arith.addf %34, %33 : vector<128x1xf32>
    %36 = tpu.reciprocal %35 {approx = true} : vector<128x1xf32> -> vector<128x1xf32>
    %c0_21 = arith.constant 0 : index
    %c0_22 = arith.constant 0 : index
    %37 = vector.load %arg8[%c0_21, %c0_22] : memref<128x1xf32, #tpu.memory_space<vmem>>, vector<128x1xf32>
    tpu.vector_store %arg8[%c0_21, %c0_22], %36 {strides = array<i32>} : memref<128x1xf32, #tpu.memory_space<vmem>>, vector<128x1xf32>,
    return
  }
  func.func @transform_0(%arg0: i32) -> (i32, i32) {
    %c0_i32 = arith.constant 0 : i32
    %c0_i32_0 = arith.constant 0 : i32
    return %arg0, %c0_i32 : i32, i32
  }
  func.func @transform_1(%arg0: i32) -> (i32, i32) {
    %c0_i32 = arith.constant 0 : i32
    %c0_i32_0 = arith.constant 0 : i32
    %c0_i32_1 = arith.constant 0 : i32
    return %c0_i32, %c0_i32_0 : i32, i32
  }
  func.func @transform_2(%arg0: i32) -> (i32, i32) {
    %c0_i32 = arith.constant 0 : i32
    %c0_i32_0 = arith.constant 0 : i32
    %c0_i32_1 = arith.constant 0 : i32
    return %c0_i32, %c0_i32_0 : i32, i32
  }
  func.func @transform_3(%arg0: i32) -> (i32, i32) {
    %c0_i32 = arith.constant 0 : i32
    %c0_i32_0 = arith.constant 0 : i32
    %c0_i32_1 = arith.constant 0 : i32
    return %c0_i32, %c0_i32_0 : i32, i32
  }
  func.func @transform_4(%arg0: i32) -> (i32, i32) {
    %c0_i32 = arith.constant 0 : i32
    %c0_i32_0 = arith.constant 0 : i32
    %c0_i32_1 = arith.constant 0 : i32
    return %c0_i32, %c0_i32_0 : i32, i32
  }
  func.func @transform_5(%arg0: i32) -> (i32, i32) {
    %c0_i32 = arith.constant 0 : i32
    %c0_i32_0 = arith.constant 0 : i32
    %c0_i32_1 = arith.constant 0 : i32
    return %c0_i32, %c0_i32_0 : i32, i32
  }
  func.func @transform_6(%arg0: i32) -> (i32, i32) {
    %c0_i32 = arith.constant 0 : i32
    %c0_i32_0 = arith.constant 0 : i32
    %c0_i32_1 = arith.constant 0 : i32
    return %c0_i32, %c0_i32_0 : i32, i32
  }
  func.func @transform_7(%arg0: i32) -> (i32, i32) {
    %c0_i32 = arith.constant 0 : i32
    %c0_i32_0 = arith.constant 0 : i32
    return %arg0, %c0_i32 : i32, i32
  }
}

</mosaic_0001>

<bundles_post_ra>
// kernel: discriminator_forward.1
= control target key start
LH: loop header
LB: loop body
LE: loop exit
PB: predicated region body
PF: predicated region fallthrough
CT: control target
= control target key end

     0   :  { %v1858_v1 = vmov 0   ;;  %vm123_vm0 = vcmask 261120   ;;  %s2663_s1 = inlined_call_operand.vmem [shape: bf16[32,512], index: 1, kind: input, shape index: {}]   ;;  %s2664_s0 = inlined_call_operand.vmem [shape: f32[128,32], index: 0, kind: input, shape index: {}]   ;;  %s2665_s3 = inlined_call_operand.vmem [shape: bf16[512,256], index: 3, kind: input, shape index: {}]   ;;  %s2666_s2 = inlined_call_operand.vmem [shape: f32[1,512], index: 2, kind: input, shape index: {}]   ;;  %s2667_s6 = inlined_call_operand.<no memory space> [shape: f32[1,1], index: 6, kind: input, shape index: {}]   ;;  %s2668_s4 = inlined_call_operand.vmem [shape: f32[1,256], index: 4, kind: input, shape index: {}]   ;;  %s2669_s5 = inlined_call_operand.vmem [shape: f32[1,256], index: 5, kind: input, shape index: {}]   ;;  %s2670_s7 = inlined_call_operand.vmem [shape: f32[128,1], index: 7, kind: output, shape index: {}]  }
   0x1   :  { %v1686_v0 = vld [vmem:[%s2663_s1 + $0x4] ss:$16 sps:$4 sm:$0xff]   ;;  %180 = vmatprep.mubr.bf16.mxu0 %v1858_v1  ;;  %293 = vmatprep.mubr.bf16.mxu1 %v1858_v1  ;;  %v1688_v2 = vld [vmem:[%s2663_s1 + $0xc] ss:$16 sps:$4 sm:$0xff]   ;;  %v1690_v3 = vld [vmem:[%s2663_s1] ss:$16 sps:$4 sm:$0xff]  }
   0x2   :  { %148 = vmatprep.subr.bf16.mxu0 %v1686_v0  ;;  %v1691_v4 = vld [vmem:[%s2663_s1 + $0x8] ss:$16 sps:$4 sm:$0xff]   ;;  %261 = vmatprep.subr.bf16.mxu1 %v1688_v2  ;;  %v1692_v5 = vld [vmem:[%s2663_s1 + $0x24] ss:$16 sps:$4 sm:$0xff]   ;;  %v1694_v6 = vld [vmem:[%s2663_s1 + $0x2c] ss:$16 sps:$4 sm:$0xff]  }
   0x3   :  { %149 = vmatpush1.bf16.msra.mxu0 %v1690_v3  ;;  %262 = vmatpush1.bf16.msra.mxu1 %v1691_v4  ;;  %v1696_v7 = vld [vmem:[%s2663_s1 + $0x20] ss:$16 sps:$4 sm:$0xff]   ;;  %v1697_v8 = vld [vmem:[%s2663_s1 + $0x28] ss:$16 sps:$4 sm:$0xff]   ;;  %v1700_v15 = vld [vmem:[%s2665_s3 + $0x4] ss:$8 sps:$4 sm:$0xff]  }
   0x4   :  { %150 = vmatprep.subr.bf16.mxu0 %v1692_v5  ;;  %v29_v9 = vld [vmem:[%s2664_s0] sm:$0xff]  ;;  %v30_v10 = vld [vmem:[%s2664_s0 + $0x8] sm:$0xff]  ;;  %263 = vmatprep.subr.bf16.mxu1 %v1694_v6  ;;  %v31_v12 = vld [vmem:[%s2664_s0 + $0x10] sm:$0xff] }
   0x5   :  { %v45_v11 = vpack.c.bf16 %v30_v10, %v29_v9  ;;  %v32_v13 = vld [vmem:[%s2664_s0 + $0x18] sm:$0xff]  ;;  %v1698_v14 = vld [vmem:[%s2665_s3] ss:$8 sps:$4 sm:$0xff]   ;;  %v1703_v17 = vld [vmem:[%s2665_s3 + $0x104] ss:$8 sps:$4 sm:$0xff]  }
   0x6   :  { %v1701_v16 = vld [vmem:[%s2665_s3 + $0x100] ss:$8 sps:$4 sm:$0xff]   ;;  %v1704_v18 = vld [vmem:[%s2665_s3 + $0x10] ss:$8 sps:$4 sm:$0xff]   ;;  %v1706_v19 = vld [vmem:[%s2665_s3 + $0x14] ss:$8 sps:$4 sm:$0xff]   ;;  %v46_v20 = vpack.c.bf16 %v32_v13, %v31_v12 }
   0x7   :  { %151 = vmatpush1.bf16.msra.mxu0 %v1696_v7  ;;  %264 = vmatpush1.bf16.msra.mxu1 %v1697_v8  ;;  %v1709_v21 = vld [vmem:[%s2665_s3 + $0x114] ss:$8 sps:$4 sm:$0xff]   ;;  %v1707_v22 = vld [vmem:[%s2665_s3 + $0x110] ss:$8 sps:$4 sm:$0xff]   ;;  %v1712_v23 = vld [vmem:[%s2665_s3 + $0x24] ss:$8 sps:$4 sm:$0xff]  }
   0x8   :  { %994 = vmatprep.subr.bf16.mxu1 %v1700_v15  ;;  %1107 = vmatprep.subr.bf16.mxu0 %v1703_v17  ;;  %v1710_v24 = vld [vmem:[%s2665_s3 + $0x20] ss:$8 sps:$4 sm:$0xff]   ;;  %v1715_v25 = vld [vmem:[%s2665_s3 + $0x124] ss:$8 sps:$4 sm:$0xff]   ;;  %v1718_v27 = vld [vmem:[%s2665_s3 + $0x34] ss:$8 sps:$4 sm:$0xff]  }
   0x9   :  { %v33_v26 = vld [vmem:[%s2664_s0 + $0x20] sm:$0xff]  ;;  %v34_v28 = vld [vmem:[%s2664_s0 + $0x28] sm:$0xff]  ;;  %v1716_v30 = vld [vmem:[%s2665_s3 + $0x30] ss:$8 sps:$4 sm:$0xff]  }
   0xa   :  { %1540 = vmatmul.mubr.msk.bf16.vlgmr.msra.gmra.mrb[0].mxu0 %vm123_vm0, %v45_v11  ;;  %1548 = vmatmul.mubr.msk.bf16.vlgmr.msra.gmra.mrb[0].mxu1 %vm123_vm0, %v45_v11  ;;  %v1713_v29 = vld [vmem:[%s2665_s3 + $0x120] ss:$8 sps:$4 sm:$0xff]   ;;  %v1721_v31 = vld [vmem:[%s2665_s3 + $0x134] ss:$8 sps:$4 sm:$0xff]   ;;  %v47_v32 = vpack.c.bf16 %v34_v28, %v33_v26  ;;  %v1719_v33 = vld [vmem:[%s2665_s3 + $0x130] ss:$8 sps:$4 sm:$0xff]  }
   0xb   :  { %190 = vmatprep.mubr.bf16.mxu0 %v1858_v1  ;;  %303 = vmatprep.mubr.bf16.mxu1 %v1858_v1  ;;  %v1724_v34 = vld [vmem:[%s2665_s3 + $0x44] ss:$8 sps:$4 sm:$0xff]   ;;  %v1722_v35 = vld [vmem:[%s2665_s3 + $0x40] ss:$8 sps:$4 sm:$0xff]   ;;  %v35_v37 = vld [vmem:[%s2664_s0 + $0x30] sm:$0xff] }
   0xc   :  { %995 = vmatpush1.bf16.msra.mxu1 %v1698_v14  ;;  %1108 = vmatpush1.bf16.msra.mxu0 %v1701_v16  ;;  %v1727_v36 = vld [vmem:[%s2665_s3 + $0x144] ss:$8 sps:$4 sm:$0xff]   ;;  %v1730_v38 = vld [vmem:[%s2665_s3 + $0x54] ss:$8 sps:$4 sm:$0xff]   ;;  %v1725_v40 = vld [vmem:[%s2665_s3 + $0x140] ss:$8 sps:$4 sm:$0xff]  }
   0xd   :  { %996 = vmatprep.subr.bf16.mxu1 %v1706_v19  ;;  %1109 = vmatprep.subr.bf16.mxu0 %v1709_v21  ;;  %v36_v39 = vld [vmem:[%s2664_s0 + $0x38] sm:$0xff]  ;;  %v1736_v45 = vld [vmem:[%s2665_s3 + $0x64] ss:$8 sps:$4 sm:$0xff]   ;;  %v1734_v46 = vld [vmem:[%s2665_s3 + $0x60] ss:$8 sps:$4 sm:$0xff]  }
   0xe   :  { %v1728_v41 = vld [vmem:[%s2665_s3 + $0x50] ss:$8 sps:$4 sm:$0xff]   ;;  %v1733_v42 = vld [vmem:[%s2665_s3 + $0x154] ss:$8 sps:$4 sm:$0xff]   ;;  %v48_v43 = vpack.c.bf16 %v36_v39, %v35_v37  ;;  %v1739_v47 = vld [vmem:[%s2665_s3 + $0x164] ss:$8 sps:$4 sm:$0xff]  }
   0xf   :  { %v1731_v44 = vld [vmem:[%s2665_s3 + $0x150] ss:$8 sps:$4 sm:$0xff]   ;;  %v37_v48 = vld [vmem:[%s2664_s0 + $0x40] sm:$0xff]  ;;  %v1742_v49 = vld [vmem:[%s2665_s3 + $0x74] ss:$8 sps:$4 sm:$0xff]  }
  0x10   :  { %997 = vmatpush1.bf16.msra.mxu1 %v1704_v18  ;;  %1110 = vmatpush1.bf16.msra.mxu0 %v1707_v22  ;;  %v38_v50 = vld [vmem:[%s2664_s0 + $0x48] sm:$0xff]  ;;  %v1740_v52 = vld [vmem:[%s2665_s3 + $0x70] ss:$8 sps:$4 sm:$0xff]   ;;  %v1745_v53 = vld [vmem:[%s2665_s3 + $0x174] ss:$8 sps:$4 sm:$0xff]  }
  0x11   :  { %998 = vmatprep.subr.bf16.mxu1 %v1712_v23  ;;  %1111 = vmatprep.subr.bf16.mxu0 %v1715_v25  ;;  %v1737_v51 = vld [vmem:[%s2665_s3 + $0x160] ss:$8 sps:$4 sm:$0xff]   ;;  %v49_v54 = vpack.c.bf16 %v38_v50, %v37_v48  ;;  %v1743_v55 = vld [vmem:[%s2665_s3 + $0x170] ss:$8 sps:$4 sm:$0xff]   ;;  %v1748_v56 = vld [vmem:[%s2665_s3 + $0x84] ss:$8 sps:$4 sm:$0xff]  }
  0x12   :  { %1541 = vmatmul.mubr.msk.bf16.gmra.mrb[4].mxu0 %vm123_vm0, %v46_v20  ;;  %1549 = vmatmul.mubr.msk.bf16.gmra.mrb[4].mxu1 %vm123_vm0, %v46_v20  ;;  %v1746_v57 = vld [vmem:[%s2665_s3 + $0x80] ss:$8 sps:$4 sm:$0xff]   ;;  %v1751_v58 = vld [vmem:[%s2665_s3 + $0x184] ss:$8 sps:$4 sm:$0xff]   ;;  %v39_v59 = vld [vmem:[%s2664_s0 + $0x50] sm:$0xff] }
  0x13   :  { %200 = vmatprep.mubr.bf16.mxu0 %v1858_v1  ;;  %313 = vmatprep.mubr.bf16.mxu1 %v1858_v1  ;;  %v1754_v60 = vld [vmem:[%s2665_s3 + $0x94] ss:$8 sps:$4 sm:$0xff]   ;;  %v1749_v62 = vld [vmem:[%s2665_s3 + $0x180] ss:$8 sps:$4 sm:$0xff]   ;;  %v1752_v63 = vld [vmem:[%s2665_s3 + $0x90] ss:$8 sps:$4 sm:$0xff]  }
  0x14   :  { %999 = vmatpush1.bf16.msra.mxu1 %v1710_v24  ;;  %1112 = vmatpush1.bf16.msra.mxu0 %v1713_v29  ;;  %v40_v61 = vld [vmem:[%s2664_s0 + $0x58] sm:$0xff]  ;;  %v1760_v4 = vld [vmem:[%s2665_s3 + $0xa4] ss:$8 sps:$4 sm:$0xff]   ;;  %v1758_v5 = vld [vmem:[%s2665_s3 + $0xa0] ss:$8 sps:$4 sm:$0xff]  }
  0x15   :  { %1000 = vmatprep.subr.bf16.mxu1 %v1718_v27  ;;  %1113 = vmatprep.subr.bf16.mxu0 %v1721_v31  ;;  %v1757_v0 = vld [vmem:[%s2665_s3 + $0x194] ss:$8 sps:$4 sm:$0xff]   ;;  %v50_v2 = vpack.c.bf16 %v40_v61, %v39_v59  ;;  %v1755_v3 = vld [vmem:[%s2665_s3 + $0x190] ss:$8 sps:$4 sm:$0xff]   ;;  %v1763_v6 = vld [vmem:[%s2665_s3 + $0x1a4] ss:$8 sps:$4 sm:$0xff]  }
  0x16   :  { %v1766_v7 = vld [vmem:[%s2665_s3 + $0xb4] ss:$8 sps:$4 sm:$0xff]   ;;  %v41_v8 = vld [vmem:[%s2664_s0 + $0x60] sm:$0xff]  ;;  %v42_v9 = vld [vmem:[%s2664_s0 + $0x68] sm:$0xff] }
  0x17   :  { %v1761_v10 = vld [vmem:[%s2665_s3 + $0x1a0] ss:$8 sps:$4 sm:$0xff]   ;;  %v1764_v11 = vld [vmem:[%s2665_s3 + $0xb0] ss:$8 sps:$4 sm:$0xff]   ;;  %v1769_v12 = vld [vmem:[%s2665_s3 + $0x1b4] ss:$8 sps:$4 sm:$0xff]   ;;  %v51_v13 = vpack.c.bf16 %v42_v9, %v41_v8 }
  0x18   :  { %1001 = vmatpush1.bf16.msra.mxu1 %v1716_v30  ;;  %1114 = vmatpush1.bf16.msra.mxu0 %v1719_v33  ;;  %v1767_v14 = vld [vmem:[%s2665_s3 + $0x1b0] ss:$8 sps:$4 sm:$0xff]   ;;  %v1772_v15 = vld [vmem:[%s2665_s3 + $0xc4] ss:$8 sps:$4 sm:$0xff]   ;;  %v1770_v16 = vld [vmem:[%s2665_s3 + $0xc0] ss:$8 sps:$4 sm:$0xff]   ;;  %v63_v33 = vlaneseq }
  0x19   :  { %1002 = vmatprep.subr.bf16.mxu1 %v1724_v34  ;;  %1115 = vmatprep.subr.bf16.mxu0 %v1727_v36  ;;  %v1775_v17 = vld [vmem:[%s2665_s3 + $0x1c4] ss:$8 sps:$4 sm:$0xff]   ;;  %v1778_v18 = vld [vmem:[%s2665_s3 + $0xd4] ss:$8 sps:$4 sm:$0xff]   ;;  %v1773_v21 = vld [vmem:[%s2665_s3 + $0x1c0] ss:$8 sps:$4 sm:$0xff]  }
  0x1a   :  { %1542 = vmatmul.mubr.msk.bf16.gmra.mrb[8].mxu0 %vm123_vm0, %v47_v32  ;;  %1550 = vmatmul.mubr.msk.bf16.gmra.mrb[8].mxu1 %vm123_vm0, %v47_v32  ;;  %v43_v19 = vld [vmem:[%s2664_s0 + $0x70] sm:$0xff]  ;;  %v44_v20 = vld [vmem:[%s2664_s0 + $0x78] sm:$0xff]  ;;  %v1784_v25 = vld [vmem:[%s2665_s3 + $0xe4] ss:$8 sps:$4 sm:$0xff]   ;;  %v64_v34 = vshrl.u32 %v63_v33, 7 }
  0x1b   :  { %210 = vmatprep.mubr.bf16.mxu0 %v1858_v1  ;;  %323 = vmatprep.mubr.bf16.mxu1 %v1858_v1  ;;  %v52_v22 = vpack.c.bf16 %v44_v20, %v43_v19  ;;  %v1781_v23 = vld [vmem:[%s2665_s3 + $0x1d4] ss:$8 sps:$4 sm:$0xff]   ;;  %v1779_v24 = vld [vmem:[%s2665_s3 + $0x1d0] ss:$8 sps:$4 sm:$0xff]   ;;  %v1787_v26 = vld [vmem:[%s2665_s3 + $0x1e4] ss:$8 sps:$4 sm:$0xff]  }
  0x1c   :  { %1003 = vmatpush1.bf16.msra.mxu1 %v1722_v35  ;;  %1116 = vmatpush1.bf16.msra.mxu0 %v1725_v40  ;;  %v1782_v27 = vld [vmem:[%s2665_s3 + $0xe0] ss:$8 sps:$4 sm:$0xff]   ;;  %v1790_v29 = vld [vmem:[%s2665_s3 + $0xf4] ss:$8 sps:$4 sm:$0xff]   ;;  %v1788_v31 = vld [vmem:[%s2665_s3 + $0xf0] ss:$8 sps:$4 sm:$0xff]  }
  0x1d   :  { %1004 = vmatprep.subr.bf16.mxu1 %v1730_v38  ;;  %1117 = vmatprep.subr.bf16.mxu0 %v1733_v42  ;;  %v1785_v28 = vld [vmem:[%s2665_s3 + $0x1e0] ss:$8 sps:$4 sm:$0xff]   ;;  %v1793_v30 = vld [vmem:[%s2665_s3 + $0x1f4] ss:$8 sps:$4 sm:$0xff]   ;;  %v1791_v32 = vld [vmem:[%s2665_s3 + $0x1f0] ss:$8 sps:$4 sm:$0xff]  }
  0x1e   :  { %v2195_v35 = vsub.s32 0, %v64_v34  ;;  %v73_v36 = vsub.s32 2, %v64_v34  ;;  %v61_v37 = vld [vmem:[%s2666_s2] sm:$0xf]  ;;  %v2200_v38 = vsub.s32 1, %v64_v34  ;;  %v77_v39 = vsub.s32 3, %v64_v34 }
  0x20   :  { %1005 = vmatpush1.bf16.msra.mxu1 %v1728_v41  ;;  %1118 = vmatpush1.bf16.msra.mxu0 %v1731_v44  ;;  %v2203_v40 = vrot.slane %v61_v37, %v2195_v35  ;;  %v2205_v41 = vrot.slane %v61_v37, %v73_v36  ;;  %v2208_v42 = vrot.slane %v61_v37, %v2200_v38 }
  0x21   :  { %1006 = vmatprep.subr.bf16.mxu1 %v1736_v45  ;;  %1119 = vmatprep.subr.bf16.mxu0 %v1739_v47 }
  0x22   :  { %1543 = vmatmul.mubr.msk.bf16.gmra.mrb[12].mxu0 %vm123_vm0, %v48_v43  ;;  %1551 = vmatmul.mubr.msk.bf16.gmra.mrb[12].mxu1 %vm123_vm0, %v48_v43  ;;  %v2210_v43 = vrot.slane %v61_v37, %v77_v39 }
  0x23   :  { %220 = vmatprep.mubr.bf16.mxu0 %v1858_v1  ;;  %333 = vmatprep.mubr.bf16.mxu1 %v1858_v1 }
  0x24   :  { %1007 = vmatpush1.bf16.msra.mxu1 %v1734_v46  ;;  %1120 = vmatpush1.bf16.msra.mxu0 %v1737_v51 }
  0x25   :  { %1008 = vmatprep.subr.bf16.mxu1 %v1742_v49  ;;  %1121 = vmatprep.subr.bf16.mxu0 %v1745_v53 }
  0x28   :  { %1009 = vmatpush1.bf16.msra.mxu1 %v1740_v52  ;;  %1122 = vmatpush1.bf16.msra.mxu0 %v1743_v55 }
  0x29   :  { %1010 = vmatprep.subr.bf16.mxu1 %v1748_v56  ;;  %1123 = vmatprep.subr.bf16.mxu0 %v1751_v58 }
  0x2a   :  { %1544 = vmatmul.mubr.msk.bf16.gmra.mrb[16].mxu0 %vm123_vm0, %v49_v54  ;;  %1552 = vmatmul.mubr.msk.bf16.gmra.mrb[16].mxu1 %vm123_vm0, %v49_v54 }
  0x2b   :  { %230 = vmatprep.mubr.bf16.mxu0 %v1858_v1  ;;  %343 = vmatprep.mubr.bf16.mxu1 %v1858_v1 }
  0x2c   :  { %1011 = vmatpush1.bf16.msra.mxu1 %v1746_v57  ;;  %1124 = vmatpush1.bf16.msra.mxu0 %v1749_v62 }
  0x2d   :  { %1012 = vmatprep.subr.bf16.mxu1 %v1754_v60  ;;  %1125 = vmatprep.subr.bf16.mxu0 %v1757_v0 }
  0x30   :  { %1013 = vmatpush1.bf16.msra.mxu1 %v1752_v63  ;;  %1126 = vmatpush1.bf16.msra.mxu0 %v1755_v3 }
  0x31   :  { %1014 = vmatprep.subr.bf16.mxu1 %v1760_v4  ;;  %1127 = vmatprep.subr.bf16.mxu0 %v1763_v6 }
  0x32   :  { %1545 = vmatmul.mubr.msk.bf16.gmra.mrb[20].mxu0 %vm123_vm0, %v50_v2  ;;  %1553 = vmatmul.mubr.msk.bf16.gmra.mrb[20].mxu1 %vm123_vm0, %v50_v2 }
  0x33   :  { %240 = vmatprep.mubr.bf16.mxu0 %v1858_v1  ;;  %353 = vmatprep.mubr.bf16.mxu1 %v1858_v1 }
  0x34   :  { %1015 = vmatpush1.bf16.msra.mxu1 %v1758_v5  ;;  %1128 = vmatpush1.bf16.msra.mxu0 %v1761_v10 }
  0x35   :  { %1016 = vmatprep.subr.bf16.mxu1 %v1766_v7  ;;  %1129 = vmatprep.subr.bf16.mxu0 %v1769_v12 }
  0x38   :  { %1017 = vmatpush1.bf16.msra.mxu1 %v1764_v11  ;;  %1130 = vmatpush1.bf16.msra.mxu0 %v1767_v14 }
  0x39   :  { %1018 = vmatprep.subr.bf16.mxu1 %v1772_v15  ;;  %1131 = vmatprep.subr.bf16.mxu0 %v1775_v17 }
  0x3a   :  { %1546 = vmatmul.mubr.msk.bf16.gmra.mrb[24].mxu0 %vm123_vm0, %v51_v13  ;;  %1554 = vmatmul.mubr.msk.bf16.gmra.mrb[24].mxu1 %vm123_vm0, %v51_v13 }
  0x3b   :  { %250 = vmatprep.mubr.bf16.mxu0 %v1858_v1  ;;  %363 = vmatprep.mubr.bf16.mxu1 %v1858_v1  ;;  %v1776_v1 = vld [vmem:[%s2665_s3 + $0xd0] ss:$8 sps:$4 sm:$0xff]  }
  0x3c   :  { %1019 = vmatpush1.bf16.msra.mxu1 %v1770_v16  ;;  %1132 = vmatpush1.bf16.msra.mxu0 %v1773_v21 }
  0x3d   :  { %1020 = vmatprep.subr.bf16.mxu1 %v1778_v18  ;;  %1133 = vmatprep.subr.bf16.mxu0 %v1781_v23 }
  0x40   :  { %1021 = vmatpush1.bf16.msra.mxu1 %v1776_v1  ;;  %1134 = vmatpush1.bf16.msra.mxu0 %v1779_v24 }
  0x41   :  { %1022 = vmatprep.subr.bf16.mxu1 %v1784_v25  ;;  %1135 = vmatprep.subr.bf16.mxu0 %v1787_v26 }
  0x42   :  { %1547 = vmatmul.mubr.msk.bf16.gmra.mrb[28].mxu0 %vm123_vm0, %v52_v22  ;;  %1555 = vmatmul.mubr.msk.bf16.gmra.mrb[28].mxu1 %vm123_vm0, %v52_v22 }
  0x44   :  { %1023 = vmatpush1.bf16.msra.mxu1 %v1782_v27  ;;  %1136 = vmatpush1.bf16.msra.mxu0 %v1785_v28 }
  0x45   :  { %1024 = vmatprep.subr.bf16.mxu1 %v1790_v29  ;;  %1137 = vmatprep.subr.bf16.mxu0 %v1793_v30 }
  0x48   :  { %1025 = vmatpush1.bf16.msra.mxu1 %v1788_v31  ;;  %1138 = vmatpush1.bf16.msra.mxu0 %v1791_v32 }
  0xdd   :  { %v182_v44 = vpop.f32.mrb[0].mxu0  ;;  %v295_v45 = vpop.f32.mrb[0].mxu1 }
  0xde   :  { %v183_v46 = vadd.f32 %v182_v44, %v2203_v40  ;;  %v296_v47 = vadd.f32 %v295_v45, %v2205_v41  ;;  %v184_v48 = vpop.f32.mrb[1].mxu0  ;;  %v297_v49 = vpop.f32.mrb[1].mxu1 }
  0xdf   :  { %v185_v50 = vadd.f32 %v184_v48, %v2208_v42  ;;  %v298_v51 = vadd.f32 %v297_v49, %v2210_v43  ;;  %v186_v52 = vpop.f32.mrb[2].mxu0  ;;  %v299_v53 = vpop.f32.mrb[2].mxu1 }
  0xe0   :  { %vm374_vm1 = vcmp.gt.f32.partialorder %v183_v46, 0.0  ;;  %v438_v54 = vmul.f32 0.2, %v183_v46  ;;  %vm376_vm2 = vcmp.gt.f32.partialorder %v296_v47, 0.0  ;;  %v440_v55 = vmul.f32 0.2, %v296_v47 }
  0xe1   :  { %vm375_vm3 = vcmp.gt.f32.partialorder %v185_v50, 0.0  ;;  %v439_v56 = vmul.f32 0.2, %v185_v50  ;;  %v187_v57 = vadd.f32 %v186_v52, %v2203_v40  ;;  %v300_v58 = vadd.f32 %v299_v53, %v2205_v41  ;;  %v188_v59 = vpop.f32.mrb[3].mxu0  ;;  %v301_v60 = vpop.f32.mrb[3].mxu1 }
  0xe2   :  { %vm377_vm4 = vcmp.gt.f32.partialorder %v298_v51, 0.0  ;;  %v441_v61 = vmul.f32 0.2, %v298_v51  ;;  %v189_v62 = vadd.f32 %v188_v59, %v2208_v42  ;;  %v302_v63 = vadd.f32 %v301_v60, %v2210_v43 }
  0xe3   :  { %vm378_vm5 = vcmp.gt.f32.partialorder %v187_v57, 0.0  ;;  %v442_v0 = vmul.f32 0.2, %v187_v57  ;;  %vm380_vm6 = vcmp.gt.f32.partialorder %v300_v58, 0.0  ;;  %v444_v2 = vmul.f32 0.2, %v300_v58 }
  0xe4   :  { %vm379_vm7 = vcmp.gt.f32.partialorder %v189_v62, 0.0  ;;  %v443_v3 = vmul.f32 0.2, %v189_v62  ;;  %vm381_vm8 = vcmp.gt.f32.partialorder %v302_v63, 0.0  ;;  %v445_v4 = vmul.f32 0.2, %v302_v63 }
  0xe5   :  { %v502_v5 = vsel %vm374_vm1, %v183_v46, %v438_v54  ;;  %v504_v6 = vsel %vm376_vm2, %v296_v47, %v440_v55  ;;  %v506_v7 = vsel %vm378_vm5, %v187_v57, %v442_v0  ;;  %v508_v8 = vsel %vm380_vm6, %v300_v58, %v444_v2  ;;  %v192_v9 = vpop.f32.mrb[4].mxu0  ;;  %v305_v10 = vpop.f32.mrb[4].mxu1 }
  0xe6   :  { %v566_v11 = vpack.c.bf16 %v506_v7, %v502_v5  ;;  %v568_v12 = vpack.c.bf16 %v508_v8, %v504_v6  ;;  %v193_v13 = vadd.f32 %v192_v9, %v2203_v40  ;;  %v306_v14 = vadd.f32 %v305_v10, %v2205_v41  ;;  %v194_v15 = vpop.f32.mrb[5].mxu0  ;;  %v307_v16 = vpop.f32.mrb[5].mxu1 }
  0xe7   :  { %v195_v17 = vadd.f32 %v194_v15, %v2208_v42  ;;  %v308_v18 = vadd.f32 %v307_v16, %v2210_v43  ;;  %v196_v19 = vpop.f32.mrb[6].mxu0  ;;  %v309_v20 = vpop.f32.mrb[6].mxu1  ;;  %v507_v21 = vsel %vm379_vm7, %v189_v62, %v443_v3  ;;  %v509_v1 = vsel %vm381_vm8, %v302_v63, %v445_v4 }
  0xe8   :  { %v446_v22 = vmul.f32 0.2, %v193_v13  ;;  %v503_v23 = vsel %vm375_vm3, %v185_v50, %v439_v56  ;;  %v505_v24 = vsel %vm377_vm4, %v298_v51, %v441_v61  ;;  %vm382_vm9 = vcmp.gt.f32.partialorder %v193_v13, 0.0  ;;  %v198_v29 = vpop.f32.mrb[7].mxu0  ;;  %v311_v30 = vpop.f32.mrb[7].mxu1 }
  0xe9   :  { %vm384_vm10 = vcmp.gt.f32.partialorder %v306_v14, 0.0  ;;  %v447_v25 = vmul.f32 0.2, %v195_v17  ;;  %v449_v26 = vmul.f32 0.2, %v308_v18  ;;  %v197_v27 = vadd.f32 %v196_v19, %v2203_v40 }
  0xea   :  { %v310_v28 = vadd.f32 %v309_v20, %v2205_v41  ;;  %v567_v31 = vpack.c.bf16 %v507_v21, %v503_v23  ;;  %v569_v32 = vpack.c.bf16 %v509_v1, %v505_v24  ;;  %vm383_vm11 = vcmp.gt.f32.partialorder %v195_v17, 0.0 }
  0xeb   :  { %vm385_vm12 = vcmp.gt.f32.partialorder %v308_v18, 0.0  ;;  %v199_v33 = vadd.f32 %v198_v29, %v2208_v42  ;;  %v312_v34 = vadd.f32 %v311_v30, %v2210_v43  ;;  %vm386_vm13 = vcmp.gt.f32.partialorder %v197_v27, 0.0 }
  0xec   :  { %v450_v36 = vmul.f32 0.2, %v197_v27  ;;  %vm388_vm14 = vcmp.gt.f32.partialorder %v310_v28, 0.0  ;;  %v452_v37 = vmul.f32 0.2, %v310_v28  ;;  %1026 = vmatprep.mubr.bf16.mxu1 %v567_v31  ;;  %1139 = vmatprep.mubr.bf16.mxu0 %v569_v32  ;;  %v511_v48 = vsel %vm383_vm11, %v195_v17, %v447_v25 }
  0xed   :  { %vm387_vm15 = vcmp.gt.f32.partialorder %v199_v33, 0.0  ;;  %v451_v39 = vmul.f32 0.2, %v199_v33  ;;  %vm389_vm0 = vcmp.gt.f32.partialorder %v312_v34, 0.0  ;;  %v453_v44 = vmul.f32 0.2, %v312_v34  ;;  %1027 = vmatmul.mubr.bf16.vlgmr.msra.gmra.mrb[32].mxu1 %v566_v11  ;;  %1140 = vmatmul.mubr.bf16.vlgmr.msra.gmra.mrb[32].mxu0 %v568_v12 }
  0xee   :  { %v448_v45 = vmul.f32 0.2, %v306_v14  ;;  %v202_v46 = vpop.f32.mrb[8].mxu0  ;;  %v315_v47 = vpop.f32.mrb[8].mxu1  ;;  %v513_v49 = vsel %vm385_vm12, %v308_v18, %v449_v26  ;;  %v514_v50 = vsel %vm386_vm13, %v197_v27, %v450_v36  ;;  %v516_v56 = vsel %vm388_vm14, %v310_v28, %v452_v37 }
  0xef   :  { %v203_v51 = vadd.f32 %v202_v46, %v2203_v40  ;;  %v204_v52 = vpop.f32.mrb[9].mxu0  ;;  %v317_v53 = vpop.f32.mrb[9].mxu1  ;;  %v515_v54 = vsel %vm387_vm15, %v199_v33, %v451_v39  ;;  %v517_v55 = vsel %vm389_vm0, %v312_v34, %v453_v44  ;;  %v2242_v0 = vadd.f32 %v315_v47, %v2205_v41 }
  0xf0   :  { %v205_v57 = vadd.f32 %v204_v52, %v2208_v42  ;;  %v318_v58 = vadd.f32 %v317_v53, %v2210_v43  ;;  %v206_v59 = vpop.f32.mrb[10].mxu0  ;;  %v319_v60 = vpop.f32.mrb[10].mxu1  ;;  %v571_v61 = vpack.c.bf16 %v515_v54, %v511_v48  ;;  %v573_v62 = vpack.c.bf16 %v517_v55, %v513_v49 }
  0xf1   :  { %v454_v63 = vmul.f32 0.2, %v203_v51  ;;  %v510_v2 = vsel %vm382_vm9, %v193_v13, %v446_v22  ;;  %v512_v3 = vsel %vm384_vm10, %v306_v14, %v448_v45  ;;  %v207_v4 = vadd.f32 %v206_v59, %v2203_v40  ;;  %v208_v5 = vpop.f32.mrb[11].mxu0  ;;  %v321_v6 = vpop.f32.mrb[11].mxu1 }
  0xf2   :  { %1036 = vmatprep.mubr.bf16.mxu1 %v571_v61  ;;  %1149 = vmatprep.mubr.bf16.mxu0 %v573_v62  ;;  %vm391_vm1 = vcmp.gt.f32.partialorder %v205_v57, 0.0  ;;  %v570_v7 = vpack.c.bf16 %v514_v50, %v510_v2  ;;  %v572_v8 = vpack.c.bf16 %v516_v56, %v512_v3  ;;  %v455_v9 = vmul.f32 0.2, %v205_v57 }
  0xf3   :  { %vm393_vm2 = vcmp.gt.f32.partialorder %v318_v58, 0.0  ;;  %v209_v10 = vadd.f32 %v208_v5, %v2208_v42  ;;  %v322_v11 = vadd.f32 %v321_v6, %v2210_v43  ;;  %v457_v16 = vmul.f32 0.2, %v318_v58 }
  0xf4   :  { %vm394_vm3 = vcmp.gt.f32.partialorder %v207_v4, 0.0  ;;  %v458_v13 = vmul.f32 0.2, %v207_v4  ;;  %v320_v14 = vadd.f32 %v319_v60, %v2205_v41  ;;  %vm390_vm6 = vcmp.gt.f32.partialorder %v203_v51, 0.0 }
  0xf5   :  { %v212_v12 = vpop.f32.mrb[12].mxu0  ;;  %v325_v15 = vpop.f32.mrb[12].mxu1  ;;  %1037 = vmatmul.mubr.bf16.gmra.mrb[36].mxu1 %v570_v7  ;;  %1150 = vmatmul.mubr.bf16.gmra.mrb[36].mxu0 %v572_v8  ;;  %vm395_vm4 = vcmp.gt.f32.partialorder %v209_v10, 0.0  ;;  %v459_v17 = vmul.f32 0.2, %v209_v10  ;;  %vm397_vm5 = vcmp.gt.f32.partialorder %v322_v11, 0.0  ;;  %v519_v28 = vsel %vm391_vm1, %v205_v57, %v455_v9 }
  0xf6   :  { %v461_v18 = vmul.f32 0.2, %v322_v11  ;;  %vm392_vm7 = vcmp.gt.f32.partialorder %v2242_v0, 0.0  ;;  %v2252_v19 = vadd.f32 %v212_v12, %v2203_v40  ;;  %v214_v20 = vpop.f32.mrb[13].mxu0  ;;  %v327_v21 = vpop.f32.mrb[13].mxu1  ;;  %v2256_v22 = vadd.f32 %v325_v15, %v2205_v41 }
  0xf7   :  { %v456_v1 = vmul.f32 0.2, %v2242_v0  ;;  %v216_v23 = vpop.f32.mrb[14].mxu0  ;;  %v329_v24 = vpop.f32.mrb[14].mxu1  ;;  %v523_v25 = vsel %vm395_vm4, %v209_v10, %v459_v17  ;;  %v215_v27 = vadd.f32 %v214_v20, %v2208_v42  ;;  %v521_v29 = vsel %vm393_vm2, %v318_v58, %v457_v16 }
  0xf8   :  { %v525_v26 = vsel %vm397_vm5, %v322_v11, %v461_v18  ;;  %v522_v30 = vsel %vm394_vm3, %v207_v4, %v458_v13  ;;  %vm396_vm8 = vcmp.gt.f32.partialorder %v320_v14, 0.0  ;;  %v460_v31 = vmul.f32 0.2, %v320_v14  ;;  %v218_v36 = vpop.f32.mrb[15].mxu0  ;;  %v331_v37 = vpop.f32.mrb[15].mxu1 }
  0xf9   :  { %v2263_v32 = vadd.f32 %v327_v21, %v2210_v43  ;;  %v518_v33 = vsel %vm390_vm6, %v203_v51, %v454_v63  ;;  %vm398_vm9 = vcmp.gt.f32.partialorder %v2252_v19, 0.0  ;;  %v2268_v34 = vmul.f32 0.2, %v2252_v19 }
  0xfa   :  { %v575_v39 = vpack.c.bf16 %v523_v25, %v519_v28  ;;  %v577_v44 = vpack.c.bf16 %v525_v26, %v521_v29  ;;  %vm400_vm10 = vcmp.gt.f32.partialorder %v2256_v22, 0.0  ;;  %v219_v45 = vadd.f32 %v218_v36, %v2208_v42 }
  0xfb   :  { %v332_v46 = vadd.f32 %v331_v37, %v2210_v43  ;;  %v574_v47 = vpack.c.bf16 %v522_v30, %v518_v33  ;;  %v464_v50 = vmul.f32 0.2, %v2256_v22  ;;  %vm399_vm11 = vcmp.gt.f32.partialorder %v215_v27, 0.0 }
  0xfc   :  { %v463_v51 = vmul.f32 0.2, %v215_v27  ;;  %v217_v52 = vadd.f32 %v216_v23, %v2203_v40  ;;  %1046 = vmatprep.mubr.bf16.mxu1 %v575_v39  ;;  %1159 = vmatprep.mubr.bf16.mxu0 %v577_v44  ;;  %vm401_vm12 = vcmp.gt.f32.partialorder %v2263_v32, 0.0  ;;  %v330_v53 = vadd.f32 %v329_v24, %v2205_v41 }
  0xfd   :  { %v222_v48 = vpop.f32.mrb[16].mxu0  ;;  %v335_v49 = vpop.f32.mrb[16].mxu1  ;;  %vm403_vm13 = vcmp.gt.f32.partialorder %v219_v45, 0.0  ;;  %v467_v54 = vmul.f32 0.2, %v219_v45  ;;  %1047 = vmatmul.mubr.bf16.gmra.mrb[40].mxu1 %v574_v47  ;;  %v520_v55 = vsel %vm392_vm7, %v2242_v0, %v456_v1  ;;  %v524_v56 = vsel %vm396_vm8, %v320_v14, %v460_v31 }
  0xfe   :  { %v2282_v57 = vadd.f32 %v222_v48, %v2203_v40  ;;  %v2285_v58 = vadd.f32 %v335_v49, %v2205_v41  ;;  %v224_v59 = vpop.f32.mrb[17].mxu0  ;;  %v337_v60 = vpop.f32.mrb[17].mxu1  ;;  %v469_v61 = vmul.f32 0.2, %v332_v46  ;;  %v576_v62 = vpack.c.bf16 %v524_v56, %v520_v55 }
  0xff   :  { %v2288_v63 = vadd.f32 %v224_v59, %v2208_v42  ;;  %v226_v2 = vpop.f32.mrb[18].mxu0  ;;  %v339_v3 = vpop.f32.mrb[18].mxu1  ;;  %v531_v4 = vsel %vm403_vm13, %v219_v45, %v467_v54  ;;  %v465_v0 = vmul.f32 0.2, %v2263_v32  ;;  %vm402_vm14 = vcmp.gt.f32.partialorder %v217_v52, 0.0 }
 0x100   :  { %vm405_vm15 = vcmp.gt.f32.partialorder %v332_v46, 0.0  ;;  %v2292_v5 = vadd.f32 %v337_v60, %v2210_v43  ;;  %v466_v6 = vmul.f32 0.2, %v217_v52  ;;  %vm404_vm0 = vcmp.gt.f32.partialorder %v330_v53, 0.0  ;;  %1160 = vmatmul.mubr.bf16.gmra.mrb[40].mxu0 %v576_v62  ;;  %v228_v12 = vpop.f32.mrb[19].mxu0  ;;  %v341_v15 = vpop.f32.mrb[19].mxu1 }
 0x101   :  { %v468_v7 = vmul.f32 0.2, %v330_v53  ;;  %v527_v8 = vsel %vm399_vm11, %v215_v27, %v463_v51  ;;  %v2296_v9 = vmul.f32 0.2, %v2282_v57  ;;  %v2299_v10 = vmul.f32 0.2, %v2285_v58 }
 0x102   :  { %v2302_v11 = vadd.f32 %v226_v2, %v2203_v40  ;;  %v579_v16 = vpack.c.bf16 %v531_v4, %v527_v8  ;;  %vm406_vm1 = vcmp.gt.f32.partialorder %v2282_v57, 0.0  ;;  %vm407_vm2 = vcmp.gt.f32.partialorder %v2288_v63, 0.0 }
 0x103   :  { %v471_v13 = vmul.f32 0.2, %v2288_v63  ;;  %v533_v14 = vsel %vm405_vm15, %v332_v46, %v469_v61  ;;  %vm408_vm3 = vcmp.gt.f32.partialorder %v2285_v58, 0.0  ;;  %vm409_vm4 = vcmp.gt.f32.partialorder %v2292_v5, 0.0 }
 0x104   :  { %v473_v20 = vmul.f32 0.2, %v2292_v5  ;;  %v2312_v21 = vadd.f32 %v339_v3, %v2205_v41  ;;  %v229_v1 = vadd.f32 %v228_v12, %v2208_v42  ;;  %1056 = vmatprep.mubr.bf16.mxu1 %v579_v16  ;;  %vm410_vm5 = vcmp.gt.f32.partialorder %v2302_v11, 0.0 }
 0x105   :  { %v232_v17 = vpop.f32.mrb[20].mxu0  ;;  %v345_v18 = vpop.f32.mrb[20].mxu1  ;;  %v342_v23 = vadd.f32 %v341_v15, %v2210_v43  ;;  %v529_v24 = vsel %vm401_vm12, %v2263_v32, %v465_v0  ;;  %v526_v25 = vsel %vm398_vm9, %v2252_v19, %v2268_v34  ;;  %v530_v27 = vsel %vm402_vm14, %v217_v52, %v466_v6 }
 0x106   :  { %v581_v26 = vpack.c.bf16 %v533_v14, %v529_v24  ;;  %v528_v28 = vsel %vm400_vm10, %v2256_v22, %v464_v50  ;;  %v532_v29 = vsel %vm404_vm0, %v330_v53, %v468_v7  ;;  %v234_v30 = vpop.f32.mrb[21].mxu0  ;;  %v347_v31 = vpop.f32.mrb[21].mxu1  ;;  %v578_v33 = vpack.c.bf16 %v530_v27, %v526_v25 }
 0x107   :  { %v580_v36 = vpack.c.bf16 %v532_v29, %v528_v28  ;;  %v2330_v32 = vadd.f32 %v232_v17, %v2203_v40  ;;  %v2333_v37 = vadd.f32 %v345_v18, %v2205_v41  ;;  %v236_v19 = vpop.f32.mrb[22].mxu0  ;;  %v349_v34 = vpop.f32.mrb[22].mxu1  ;;  %v474_v39 = vmul.f32 0.2, %v2302_v11 }
 0x108   :  { %v475_v44 = vmul.f32 0.2, %v229_v1  ;;  %1169 = vmatprep.mubr.bf16.mxu0 %v581_v26  ;;  %v2337_v22 = vadd.f32 %v234_v30, %v2208_v42  ;;  %v2340_v45 = vadd.f32 %v347_v31, %v2210_v43  ;;  %v238_v46 = vpop.f32.mrb[23].mxu0  ;;  %v351_v47 = vpop.f32.mrb[23].mxu1  ;;  %vm411_vm6 = vcmp.gt.f32.partialorder %v229_v1, 0.0  ;;  %1057 = vmatmul.mubr.bf16.gmra.mrb[44].mxu1 %v578_v33 }
 0x109   :  { %v477_v48 = vmul.f32 0.2, %v342_v23  ;;  %1170 = vmatmul.mubr.bf16.gmra.mrb[44].mxu0 %v580_v36  ;;  %v2343_v49 = vadd.f32 %v236_v19, %v2203_v40  ;;  %v2346_v50 = vadd.f32 %v349_v34, %v2205_v41  ;;  %vm412_vm7 = vcmp.gt.f32.partialorder %v2312_v21, 0.0 }
 0x10a   :  { %v476_v51 = vmul.f32 0.2, %v2312_v21  ;;  %vm413_vm8 = vcmp.gt.f32.partialorder %v342_v23, 0.0  ;;  %v2351_v52 = vmul.f32 0.2, %v2330_v32  ;;  %vm414_vm9 = vcmp.gt.f32.partialorder %v2330_v32, 0.0 }
 0x10b   :  { %v2355_v53 = vmul.f32 0.2, %v2333_v37  ;;  %vm415_vm10 = vcmp.gt.f32.partialorder %v2337_v22, 0.0  ;;  %v479_v54 = vmul.f32 0.2, %v2337_v22  ;;  %vm417_vm11 = vcmp.gt.f32.partialorder %v2340_v45, 0.0 }
 0x10c   :  { %v481_v55 = vmul.f32 0.2, %v2340_v45  ;;  %v239_v56 = vadd.f32 %v238_v46, %v2208_v42  ;;  %v535_v59 = vsel %vm407_vm2, %v2288_v63, %v471_v13  ;;  %v539_v60 = vsel %vm411_vm6, %v229_v1, %v475_v44 }
 0x10d   :  { %v242_v61 = vpop.f32.mrb[24].mxu0  ;;  %v355_v62 = vpop.f32.mrb[24].mxu1  ;;  %vm416_vm12 = vcmp.gt.f32.partialorder %v2333_v37, 0.0  ;;  %vm418_vm13 = vcmp.gt.f32.partialorder %v2343_v49, 0.0  ;;  %v2369_v2 = vmul.f32 0.2, %v2343_v49  ;;  %v583_v4 = vpack.c.bf16 %v539_v60, %v535_v59 }
 0x10e   :  { %v2372_v3 = vmul.f32 0.2, %v2346_v50  ;;  %v541_v0 = vsel %vm413_vm8, %v342_v23, %v477_v48  ;;  %v244_v6 = vpop.f32.mrb[25].mxu0  ;;  %v357_v7 = vpop.f32.mrb[25].mxu1  ;;  %v483_v63 = vmul.f32 0.2, %v239_v56  ;;  %v352_v8 = vadd.f32 %v351_v47, %v2210_v43 }
 0x10f   :  { %v537_v12 = vsel %vm409_vm4, %v2292_v5, %v473_v20  ;;  %v534_v15 = vsel %vm406_vm1, %v2282_v57, %v2296_v9  ;;  %1066 = vmatprep.mubr.bf16.mxu1 %v583_v4  ;;  %v538_v13 = vsel %vm410_vm5, %v2302_v11, %v474_v39  ;;  %v536_v14 = vsel %vm408_vm3, %v2285_v58, %v2299_v10  ;;  %v246_v17 = vpop.f32.mrb[26].mxu0  ;;  %v359_v18 = vpop.f32.mrb[26].mxu1 }
 0x110   :  { %v585_v16 = vpack.c.bf16 %v541_v0, %v537_v12  ;;  %v540_v5 = vsel %vm412_vm7, %v2312_v21, %v476_v51  ;;  %v582_v20 = vpack.c.bf16 %v538_v13, %v534_v15  ;;  %v2394_v57 = vadd.f32 %v242_v61, %v2203_v40  ;;  %v248_v11 = vpop.f32.mrb[27].mxu0  ;;  %v361_v23 = vpop.f32.mrb[27].mxu1 }
 0x111   :  { %v584_v1 = vpack.c.bf16 %v540_v5, %v536_v14  ;;  %v2397_v9 = vadd.f32 %v355_v62, %v2205_v41  ;;  %v2400_v24 = vadd.f32 %v244_v6, %v2208_v42  ;;  %v2403_v58 = vadd.f32 %v357_v7, %v2210_v43 }
 0x112   :  { %1179 = vmatprep.mubr.bf16.mxu0 %v585_v16  ;;  %v2406_v10 = vadd.f32 %v246_v17, %v2203_v40  ;;  %v2409_v21 = vadd.f32 %v359_v18, %v2205_v41  ;;  %vm420_vm14 = vcmp.gt.f32.partialorder %v2346_v50, 0.0  ;;  %vm419_vm15 = vcmp.gt.f32.partialorder %v239_v56, 0.0  ;;  %1067 = vmatmul.mubr.bf16.gmra.mrb[48].mxu1 %v582_v20 }
 0x113   :  { %v485_v25 = vmul.f32 0.2, %v352_v8  ;;  %1180 = vmatmul.mubr.bf16.gmra.mrb[48].mxu0 %v584_v1  ;;  %v2413_v26 = vmul.f32 0.2, %v2394_v57  ;;  %vm421_vm0 = vcmp.gt.f32.partialorder %v352_v8, 0.0  ;;  %vm423_vm1 = vcmp.gt.f32.partialorder %v2400_v24, 0.0 }
 0x114   :  { %v2416_v27 = vmul.f32 0.2, %v2397_v9  ;;  %v487_v28 = vmul.f32 0.2, %v2400_v24  ;;  %vm422_vm2 = vcmp.gt.f32.partialorder %v2394_v57, 0.0  ;;  %vm425_vm3 = vcmp.gt.f32.partialorder %v2403_v58, 0.0 }
 0x115   :  { %v489_v29 = vmul.f32 0.2, %v2403_v58  ;;  %v2424_v30 = vmul.f32 0.2, %v2406_v10  ;;  %v2427_v31 = vmul.f32 0.2, %v2409_v21  ;;  %v249_v33 = vadd.f32 %v248_v11, %v2208_v42 }
 0x116   :  { %v362_v36 = vadd.f32 %v361_v23, %v2210_v43  ;;  %v543_v19 = vsel %vm415_vm10, %v2337_v22, %v479_v54  ;;  %v547_v34 = vsel %vm419_vm15, %v239_v56, %v483_v63  ;;  %v252_v39 = vpop.f32.mrb[28].mxu0  ;;  %v365_v44 = vpop.f32.mrb[28].mxu1  ;;  %vm424_vm4 = vcmp.gt.f32.partialorder %v2397_v9, 0.0 }
 0x117   :  { %vm426_vm5 = vcmp.gt.f32.partialorder %v2406_v10, 0.0  ;;  %vm428_vm6 = vcmp.gt.f32.partialorder %v2409_v21, 0.0  ;;  %v587_v46 = vpack.c.bf16 %v547_v34, %v543_v19  ;;  %v545_v47 = vsel %vm417_vm11, %v2340_v45, %v481_v55  ;;  %v254_v51 = vpop.f32.mrb[29].mxu0  ;;  %v367_v54 = vpop.f32.mrb[29].mxu1  ;;  %v662_v34 = vld [vmem:[%s2668_s4] sm:$0x3] }
 0x118   :  { %v549_v48 = vsel %vm421_vm0, %v352_v8, %v485_v25  ;;  %v542_v22 = vsel %vm414_vm9, %v2330_v32, %v2351_v52  ;;  %vm427_vm7 = vcmp.gt.f32.partialorder %v249_v33, 0.0  ;;  %v491_v56 = vmul.f32 0.2, %v249_v33  ;;  %v256_v52 = vpop.f32.mrb[30].mxu0  ;;  %v369_v61 = vpop.f32.mrb[30].mxu1 }
 0x119   :  { %vm429_vm8 = vcmp.gt.f32.partialorder %v362_v36, 0.0  ;;  %v493_v59 = vmul.f32 0.2, %v362_v36  ;;  %1076 = vmatprep.mubr.bf16.mxu1 %v587_v46  ;;  %v589_v60 = vpack.c.bf16 %v549_v48, %v545_v47  ;;  %v546_v45 = vsel %vm418_vm13, %v2343_v49, %v2369_v2  ;;  %v258_v7 = vpop.f32.mrb[31].mxu0  ;;  %v371_v49 = vpop.f32.mrb[31].mxu1 }
 0x11a   :  { %v544_v55 = vsel %vm416_vm12, %v2333_v37, %v2355_v53  ;;  %v548_v32 = vsel %vm420_vm14, %v2346_v50, %v2372_v3  ;;  %v586_v62 = vpack.c.bf16 %v546_v45, %v542_v22  ;;  %v253_v0 = vadd.f32 %v252_v39, %v2203_v40 }
 0x11b   :  { %v588_v4 = vpack.c.bf16 %v548_v32, %v544_v55  ;;  %v366_v6 = vadd.f32 %v365_v44, %v2205_v41  ;;  %1189 = vmatprep.mubr.bf16.mxu0 %v589_v60  ;;  %v255_v2 = vadd.f32 %v254_v51, %v2208_v42  ;;  %v368_v37 = vadd.f32 %v367_v54, %v2210_v43  ;;  %v1316_v54 = vld [vmem:[%s2669_s5] sm:$0x3] }
 0x11c   :  { %v257_v53 = vadd.f32 %v256_v52, %v2203_v40  ;;  %v370_v63 = vadd.f32 %v369_v61, %v2205_v41  ;;  %1077 = vmatmul.mubr.bf16.gmra.mrb[52].mxu1 %v586_v62  ;;  %vm430_vm9 = vcmp.gt.f32.partialorder %v253_v0, 0.0  ;;  %v494_v50 = vmul.f32 0.2, %v253_v0 }
 0x11d   :  { %1190 = vmatmul.mubr.bf16.gmra.mrb[52].mxu0 %v588_v4  ;;  %vm432_vm10 = vcmp.gt.f32.partialorder %v366_v6, 0.0  ;;  %v496_v3 = vmul.f32 0.2, %v366_v6  ;;  %vm431_vm11 = vcmp.gt.f32.partialorder %v255_v2, 0.0  ;;  %v495_v8 = vmul.f32 0.2, %v255_v2 }
 0x11e   :  { %vm433_vm12 = vcmp.gt.f32.partialorder %v368_v37, 0.0  ;;  %v497_v12 = vmul.f32 0.2, %v368_v37  ;;  %vm434_vm13 = vcmp.gt.f32.partialorder %v257_v53, 0.0  ;;  %v498_v15 = vmul.f32 0.2, %v257_v53 }
 0x11f   :  { %vm436_vm14 = vcmp.gt.f32.partialorder %v370_v63, 0.0  ;;  %v500_v16 = vmul.f32 0.2, %v370_v63  ;;  %v259_v13 = vadd.f32 %v258_v7, %v2208_v42  ;;  %v372_v40 = vadd.f32 %v371_v49, %v2210_v43 }
 0x120   :  { %v551_v41 = vsel %vm423_vm1, %v2400_v24, %v487_v28  ;;  %v555_v14 = vsel %vm427_vm7, %v249_v33, %v491_v56  ;;  %v553_v17 = vsel %vm425_vm3, %v2403_v58, %v489_v29  ;;  %v557_v18 = vsel %vm429_vm8, %v362_v36, %v493_v59 }
 0x121   :  { %v591_v5 = vpack.c.bf16 %v555_v14, %v551_v41  ;;  %v550_v42 = vsel %vm422_vm2, %v2394_v57, %v2413_v26  ;;  %vm435_vm15 = vcmp.gt.f32.partialorder %v259_v13, 0.0  ;;  %v499_v43 = vmul.f32 0.2, %v259_v13 }
 0x122   :  { %vm437_vm0 = vcmp.gt.f32.partialorder %v372_v40, 0.0  ;;  %v501_v20 = vmul.f32 0.2, %v372_v40  ;;  %v593_v1 = vpack.c.bf16 %v557_v18, %v553_v17  ;;  %v554_v11 = vsel %vm426_vm5, %v2406_v10, %v2424_v30 }
 0x123   :  { %1086 = vmatprep.mubr.bf16.mxu1 %v591_v5  ;;  %v552_v23 = vsel %vm424_vm4, %v2397_v9, %v2416_v27  ;;  %v556_v57 = vsel %vm428_vm6, %v2409_v21, %v2427_v31  ;;  %v590_v24 = vpack.c.bf16 %v554_v11, %v550_v42  ;;  %v559_v25 = vsel %vm431_vm11, %v255_v2, %v495_v8 }
 0x124   :  { %v592_v58 = vpack.c.bf16 %v556_v57, %v552_v23  ;;  %v563_v26 = vsel %vm435_vm15, %v259_v13, %v499_v43  ;;  %1199 = vmatprep.mubr.bf16.mxu0 %v593_v1  ;;  %v561_v29 = vsel %vm433_vm12, %v368_v37, %v497_v12  ;;  %v565_v10 = vsel %vm437_vm0, %v372_v40, %v501_v20 }
 0x125   :  { %v595_v28 = vpack.c.bf16 %v563_v26, %v559_v25  ;;  %1087 = vmatmul.mubr.bf16.gmra.mrb[56].mxu1 %v590_v24  ;;  %v597_v30 = vpack.c.bf16 %v565_v10, %v561_v29  ;;  %v558_v9 = vsel %vm430_vm9, %v253_v0, %v494_v50  ;;  %v562_v27 = vsel %vm434_vm13, %v257_v53, %v498_v15 }
 0x126   :  { %1200 = vmatmul.mubr.bf16.gmra.mrb[56].mxu0 %v592_v58  ;;  %v594_v33 = vpack.c.bf16 %v562_v27, %v558_v9  ;;  %v560_v21 = vsel %vm432_vm10, %v366_v6, %v496_v3  ;;  %v564_v31 = vsel %vm436_vm14, %v370_v63, %v500_v16  ;;  %v12_v19 = vstv %s2667_s6 }
 0x127   :  { %1096 = vmatprep.mubr.bf16.mxu1 %v595_v28  ;;  %1209 = vmatprep.mubr.bf16.mxu0 %v597_v30  ;;  %v596_v36 = vpack.c.bf16 %v564_v31, %v560_v21  ;;  %13 = vst [vmem:[#allocation2] sm:$0x1] %v12_v19  ;;  %v2503_v39 = vrot.slane %v662_v34, %v2195_v35 }
 0x128   :  { %v2506_v44 = vrot.slane %v662_v34, %v2200_v38  ;;  %v2516_v4 = vrot.slane %v1316_v54, %v2195_v35  ;;  %v2519_v7 = vrot.slane %v1316_v54, %v2200_v38 }
 0x12d   :  { %1097 = vmatmul.mubr.bf16.gmra.mrb[60].mxu1 %v594_v33 }
 0x12e   :  { %1210 = vmatmul.mubr.bf16.gmra.mrb[60].mxu0 %v596_v36 }
 0x1c0   :  { %v1028_v46 = vpop.f32.mrb[32].mxu1  ;;  %v1141_v47 = vpop.f32.mrb[32].mxu0 }
 0x1c1   :  { %v1029_v48 = vadd.f32 %v1028_v46, %v2503_v39  ;;  %v1030_v22 = vpop.f32.mrb[33].mxu1  ;;  %v1143_v51 = vpop.f32.mrb[33].mxu0 }
 0x1c2   :  { %v1031_v56 = vadd.f32 %v1030_v22, %v2506_v44  ;;  %v1032_v59 = vpop.f32.mrb[34].mxu1  ;;  %v1145_v60 = vpop.f32.mrb[34].mxu0 }
 0x1c3   :  { %v1142_v45 = vadd.f32 %v1141_v47, %v1029_v48  ;;  %v1033_v55 = vadd.f32 %v1032_v59, %v2503_v39  ;;  %v1034_v32 = vpop.f32.mrb[35].mxu1  ;;  %v1147_v52 = vpop.f32.mrb[35].mxu0 }
 0x1c4   :  { %v1144_v61 = vadd.f32 %v1143_v51, %v1031_v56  ;;  %v1035_v62 = vadd.f32 %v1034_v32, %v2506_v44 }
 0x1c5   :  { %vm1220_vm1 = vcmp.gt.f32.partialorder %v1142_v45, 0.0  ;;  %v1252_v0 = vmul.f32 0.2, %v1142_v45  ;;  %v1146_v6 = vadd.f32 %v1145_v60, %v1033_v55 }
 0x1c6   :  { %vm1221_vm2 = vcmp.gt.f32.partialorder %v1144_v61, 0.0  ;;  %v1253_v49 = vmul.f32 0.2, %v1144_v61  ;;  %v1148_v2 = vadd.f32 %v1147_v52, %v1035_v62 }
 0x1c7   :  { %vm1222_vm3 = vcmp.gt.f32.partialorder %v1146_v6, 0.0  ;;  %v1254_v37 = vmul.f32 0.2, %v1146_v6  ;;  %v1284_v53 = vsel %vm1220_vm1, %v1142_v45, %v1252_v0 }
 0x1c8   :  { %vm1223_vm4 = vcmp.gt.f32.partialorder %v1148_v2, 0.0  ;;  %v1255_v63 = vmul.f32 0.2, %v1148_v2  ;;  %v1038_v50 = vpop.f32.mrb[36].mxu1  ;;  %v1151_v3 = vpop.f32.mrb[36].mxu0  ;;  %v1285_v8 = vsel %vm1221_vm2, %v1144_v61, %v1253_v49  ;;  %v1328_v35 = vmul.f32 %v2516_v4, %v1284_v53 }
 0x1c9   :  { %v1039_v12 = vadd.f32 %v1038_v50, %v2503_v39  ;;  %v1040_v15 = vpop.f32.mrb[37].mxu1  ;;  %v1153_v16 = vpop.f32.mrb[37].mxu0  ;;  %v1329_v38 = vmul.f32 %v2519_v7, %v1285_v8  ;;  %v1286_v13 = vsel %vm1222_vm3, %v1146_v6, %v1254_v37 }
 0x1ca   :  { %v1041_v40 = vadd.f32 %v1040_v15, %v2506_v44  ;;  %v1042_v41 = vpop.f32.mrb[38].mxu1  ;;  %v1155_v14 = vpop.f32.mrb[38].mxu0  ;;  %v1287_v5 = vsel %vm1223_vm4, %v1148_v2, %v1255_v63  ;;  %v1330_v17 = vmul.f32 %v2516_v4, %v1286_v13 }
 0x1cb   :  { %v1152_v18 = vadd.f32 %v1151_v3, %v1039_v12  ;;  %v1043_v42 = vadd.f32 %v1042_v41, %v2503_v39  ;;  %v1044_v43 = vpop.f32.mrb[39].mxu1  ;;  %v1157_v20 = vpop.f32.mrb[39].mxu0  ;;  %v1360_v1 = vadd.f32 %v1329_v38, %v1328_v35  ;;  %v1331_v11 = vmul.f32 %v2519_v7, %v1287_v5 }
 0x1cc   :  { %v1154_v23 = vadd.f32 %v1153_v16, %v1041_v40  ;;  %v1045_v57 = vadd.f32 %v1044_v43, %v2506_v44 }
 0x1cd   :  { %vm1224_vm5 = vcmp.gt.f32.partialorder %v1152_v18, 0.0  ;;  %v1256_v24 = vmul.f32 0.2, %v1152_v18  ;;  %v1156_v58 = vadd.f32 %v1155_v14, %v1043_v42  ;;  %1361 = vadd.xlane.f32.xlu0 %v1360_v1  ;;  %v1363_v25 = vadd.f32 %v1331_v11, %v1330_v17 }
 0x1ce   :  { %vm1225_vm6 = vcmp.gt.f32.partialorder %v1154_v23, 0.0  ;;  %v1257_v26 = vmul.f32 0.2, %v1154_v23  ;;  %v1158_v28 = vadd.f32 %v1157_v20, %v1045_v57 }
 0x1cf   :  { %vm1226_vm7 = vcmp.gt.f32.partialorder %v1156_v58, 0.0  ;;  %v1258_v29 = vmul.f32 0.2, %v1156_v58  ;;  %v1288_v10 = vsel %vm1224_vm5, %v1152_v18, %v1256_v24 }
 0x1d0   :  { %vm1227_vm8 = vcmp.gt.f32.partialorder %v1158_v28, 0.0  ;;  %v1259_v30 = vmul.f32 0.2, %v1158_v28  ;;  %v1289_v9 = vsel %vm1225_vm6, %v1154_v23, %v1257_v26  ;;  %v1332_v27 = vmul.f32 %v2516_v4, %v1288_v10  ;;  %v1048_v33 = vpop.f32.mrb[40].mxu1 }
 0x1d1   :  { %1364 = vadd.xlane.f32.xlu0 %v1363_v25  ;;  %v1333_v21 = vmul.f32 %v2519_v7, %v1289_v9  ;;  %v1290_v31 = vsel %vm1226_vm7, %v1156_v58, %v1258_v29  ;;  %v1049_v36 = vadd.f32 %v1048_v33, %v2503_v39  ;;  %v1050_v19 = vpop.f32.mrb[41].mxu1 }
 0x1d2   :  { %v1291_v34 = vsel %vm1227_vm8, %v1158_v28, %v1259_v30  ;;  %v1334_v46 = vmul.f32 %v2516_v4, %v1290_v31  ;;  %v1051_v47 = vadd.f32 %v1050_v19, %v2506_v44  ;;  %v1052_v48 = vpop.f32.mrb[42].mxu1 }
 0x1d3   :  { %v1366_v22 = vadd.f32 %v1333_v21, %v1332_v27  ;;  %v1335_v51 = vmul.f32 %v2519_v7, %v1291_v34  ;;  %v1053_v54 = vadd.f32 %v1052_v48, %v2503_v39  ;;  %v1054_v56 = vpop.f32.mrb[43].mxu1  ;;  %v1161_v59 = vpop.f32.mrb[40].mxu0 }
 0x1d4   :  { %v1055_v60 = vadd.f32 %v1054_v56, %v2506_v44  ;;  %v1162_v55 = vadd.f32 %v1161_v59, %v1049_v36  ;;  %v1163_v32 = vpop.f32.mrb[41].mxu0 }
 0x1d5   :  { %1367 = vadd.xlane.f32.xlu1 %v1366_v22  ;;  %v1369_v45 = vadd.f32 %v1335_v51, %v1334_v46  ;;  %v1164_v52 = vadd.f32 %v1163_v32, %v1051_v47  ;;  %v1165_v61 = vpop.f32.mrb[42].mxu0 }
 0x1d6   :  { %vm1228_vm9 = vcmp.gt.f32.partialorder %v1162_v55, 0.0  ;;  %v1260_v62 = vmul.f32 0.2, %v1162_v55  ;;  %v1166_v0 = vadd.f32 %v1165_v61, %v1053_v54  ;;  %v1167_v6 = vpop.f32.mrb[43].mxu0 }
 0x1d7   :  { %vm1229_vm10 = vcmp.gt.f32.partialorder %v1164_v52, 0.0  ;;  %v1261_v49 = vmul.f32 0.2, %v1164_v52  ;;  %v1168_v2 = vadd.f32 %v1167_v6, %v1055_v60 }
 0x1d8   :  { %vm1230_vm11 = vcmp.gt.f32.partialorder %v1166_v0, 0.0  ;;  %v1262_v37 = vmul.f32 0.2, %v1166_v0  ;;  %v1292_v53 = vsel %vm1228_vm9, %v1162_v55, %v1260_v62 }
 0x1d9   :  { %1370 = vadd.xlane.f32.xlu1 %v1369_v45  ;;  %vm1231_vm12 = vcmp.gt.f32.partialorder %v1168_v2, 0.0  ;;  %v1263_v63 = vmul.f32 0.2, %v1168_v2  ;;  %v1293_v50 = vsel %vm1229_vm10, %v1164_v52, %v1261_v49  ;;  %v1336_v3 = vmul.f32 %v2516_v4, %v1292_v53 }
 0x1da   :  { %v1337_v8 = vmul.f32 %v2519_v7, %v1293_v50  ;;  %v1294_v35 = vsel %vm1230_vm11, %v1166_v0, %v1262_v37 }
 0x1db   :  { %v1058_v12 = vpop.f32.mrb[44].mxu1  ;;  %v1295_v16 = vsel %vm1231_vm12, %v1168_v2, %v1263_v63  ;;  %v1338_v38 = vmul.f32 %v2516_v4, %v1294_v35 }
 0x1dc   :  { %v1171_v15 = vpop.f32.mrb[44].mxu0  ;;  %v1059_v13 = vadd.f32 %v1058_v12, %v2503_v39  ;;  %v1060_v40 = vpop.f32.mrb[45].mxu1  ;;  %v1372_v14 = vadd.f32 %v1337_v8, %v1336_v3  ;;  %v1339_v5 = vmul.f32 %v2519_v7, %v1295_v16 }
 0x1dd   :  { %v1173_v41 = vpop.f32.mrb[45].mxu0  ;;  %v1061_v17 = vadd.f32 %v1060_v40, %v2506_v44  ;;  %v1062_v18 = vpop.f32.mrb[46].mxu1 }
 0x1de   :  { %v1175_v42 = vpop.f32.mrb[46].mxu0  ;;  %v1172_v43 = vadd.f32 %v1171_v15, %v1059_v13  ;;  %v1063_v20 = vadd.f32 %v1062_v18, %v2503_v39  ;;  %v1064_v1 = vpop.f32.mrb[47].mxu1  ;;  %1373 = vadd.xlane.f32.xlu0 %v1372_v14  ;;  %v1375_v23 = vadd.f32 %v1339_v5, %v1338_v38 }
 0x1df   :  { %v1177_v11 = vpop.f32.mrb[47].mxu0  ;;  %v1174_v57 = vadd.f32 %v1173_v41, %v1061_v17  ;;  %v1065_v24 = vadd.f32 %v1064_v1, %v2506_v44 }
 0x1e0   :  { %vm1232_vm13 = vcmp.gt.f32.partialorder %v1172_v43, 0.0  ;;  %v1264_v58 = vmul.f32 0.2, %v1172_v43  ;;  %v1176_v25 = vadd.f32 %v1175_v42, %v1063_v20  ;;  %1376 = vadd.xlane.f32.xlu1 %v1375_v23 }
 0x1e1   :  { %vm1233_vm14 = vcmp.gt.f32.partialorder %v1174_v57, 0.0  ;;  %v1265_v26 = vmul.f32 0.2, %v1174_v57  ;;  %v1178_v28 = vadd.f32 %v1177_v11, %v1065_v24 }
 0x1e2   :  { %vm1234_vm15 = vcmp.gt.f32.partialorder %v1176_v25, 0.0  ;;  %v1266_v29 = vmul.f32 0.2, %v1176_v25  ;;  %v1296_v10 = vsel %vm1232_vm13, %v1172_v43, %v1264_v58 }
 0x1e3   :  { %vm1235_vm0 = vcmp.gt.f32.partialorder %v1178_v28, 0.0  ;;  %v1267_v30 = vmul.f32 0.2, %v1178_v28  ;;  %v1297_v9 = vsel %vm1233_vm14, %v1174_v57, %v1265_v26  ;;  %v1340_v27 = vmul.f32 %v2516_v4, %v1296_v10 }
 0x1e4   :  { %v1341_v31 = vmul.f32 %v2519_v7, %v1297_v9  ;;  %v1298_v36 = vsel %vm1234_vm15, %v1176_v25, %v1266_v29 }
 0x1e5   :  { %v1068_v33 = vpop.f32.mrb[48].mxu1  ;;  %v1299_v47 = vsel %vm1235_vm0, %v1178_v28, %v1267_v30  ;;  %v1342_v48 = vmul.f32 %v2516_v4, %v1298_v36 }
 0x1e6   :  { %v1181_v21 = vpop.f32.mrb[48].mxu0  ;;  %v1069_v19 = vadd.f32 %v1068_v33, %v2503_v39  ;;  %v1070_v34 = vpop.f32.mrb[49].mxu1  ;;  %v1378_v56 = vadd.f32 %v1341_v31, %v1340_v27  ;;  %v1343_v59 = vmul.f32 %v2519_v7, %v1299_v47 }
 0x1e7   :  { %v1183_v46 = vpop.f32.mrb[49].mxu0  ;;  %v1071_v22 = vadd.f32 %v1070_v34, %v2506_v44  ;;  %v1072_v51 = vpop.f32.mrb[50].mxu1 }
 0x1e8   :  { %v1185_v54 = vpop.f32.mrb[50].mxu0  ;;  %v1182_v60 = vadd.f32 %v1181_v21, %v1069_v19  ;;  %v1073_v45 = vadd.f32 %v1072_v51, %v2503_v39  ;;  %v1074_v55 = vpop.f32.mrb[51].mxu1  ;;  %1379 = vadd.xlane.f32.xlu0 %v1378_v56  ;;  %v1381_v62 = vadd.f32 %v1343_v59, %v1342_v48 }
 0x1e9   :  { %v1187_v32 = vpop.f32.mrb[51].mxu0  ;;  %v1184_v52 = vadd.f32 %v1183_v46, %v1071_v22  ;;  %v1075_v61 = vadd.f32 %v1074_v55, %v2506_v44 }
 0x1ea   :  { %vm1236_vm1 = vcmp.gt.f32.partialorder %v1182_v60, 0.0  ;;  %v1268_v0 = vmul.f32 0.2, %v1182_v60  ;;  %v1186_v6 = vadd.f32 %v1185_v54, %v1073_v45  ;;  %1382 = vadd.xlane.f32.xlu1 %v1381_v62 }
 0x1eb   :  { %vm1237_vm2 = vcmp.gt.f32.partialorder %v1184_v52, 0.0  ;;  %v1269_v49 = vmul.f32 0.2, %v1184_v52  ;;  %v1188_v2 = vadd.f32 %v1187_v32, %v1075_v61 }
 0x1ec   :  { %vm1238_vm3 = vcmp.gt.f32.partialorder %v1186_v6, 0.0  ;;  %v1270_v37 = vmul.f32 0.2, %v1186_v6  ;;  %v1300_v53 = vsel %vm1236_vm1, %v1182_v60, %v1268_v0  ;;  %vm1511_vm1 = vcmask 7168  }
 0x1ed   :  { %vm1239_vm4 = vcmp.gt.f32.partialorder %v1188_v2, 0.0  ;;  %v1271_v63 = vmul.f32 0.2, %v1188_v2  ;;  %v1301_v50 = vsel %vm1237_vm2, %v1184_v52, %v1269_v49  ;;  %v1344_v3 = vmul.f32 %v2516_v4, %v1300_v53 }
 0x1ee   :  { %v1345_v12 = vmul.f32 %v2519_v7, %v1301_v50  ;;  %v1302_v15 = vsel %vm1238_vm3, %v1186_v6, %v1270_v37 }
 0x1ef   :  { %v1078_v8 = vpop.f32.mrb[52].mxu1  ;;  %v1303_v40 = vsel %vm1239_vm4, %v1188_v2, %v1271_v63  ;;  %v1346_v41 = vmul.f32 %v2516_v4, %v1302_v15 }
 0x1f0   :  { %v1191_v35 = vpop.f32.mrb[52].mxu0  ;;  %v1079_v16 = vadd.f32 %v1078_v8, %v2503_v39  ;;  %v1080_v38 = vpop.f32.mrb[53].mxu1  ;;  %v1384_v18 = vadd.f32 %v1345_v12, %v1344_v3  ;;  %v1347_v42 = vmul.f32 %v2519_v7, %v1303_v40 }
 0x1f1   :  { %v1193_v13 = vpop.f32.mrb[53].mxu0  ;;  %v1081_v14 = vadd.f32 %v1080_v38, %v2506_v44  ;;  %v1082_v5 = vpop.f32.mrb[54].mxu1 }
 0x1f2   :  { %v1195_v17 = vpop.f32.mrb[54].mxu0  ;;  %v1192_v43 = vadd.f32 %v1191_v35, %v1079_v16  ;;  %v1083_v20 = vadd.f32 %v1082_v5, %v2503_v39  ;;  %v1084_v1 = vpop.f32.mrb[55].mxu1  ;;  %1385 = vadd.xlane.f32.xlu0 %v1384_v18  ;;  %v1387_v24 = vadd.f32 %v1347_v42, %v1346_v41 }
 0x1f3   :  { %v1197_v11 = vpop.f32.mrb[55].mxu0  ;;  %v1194_v23 = vadd.f32 %v1193_v13, %v1081_v14  ;;  %v1085_v57 = vadd.f32 %v1084_v1, %v2506_v44 }
 0x1f4   :  { %vm1240_vm5 = vcmp.gt.f32.partialorder %v1192_v43, 0.0  ;;  %v1272_v58 = vmul.f32 0.2, %v1192_v43  ;;  %v1196_v25 = vadd.f32 %v1195_v17, %v1083_v20  ;;  %1388 = vadd.xlane.f32.xlu1 %v1387_v24 }
 0x1f5   :  { %vm1241_vm6 = vcmp.gt.f32.partialorder %v1194_v23, 0.0  ;;  %v1273_v26 = vmul.f32 0.2, %v1194_v23  ;;  %v1198_v28 = vadd.f32 %v1197_v11, %v1085_v57 }
 0x1f6   :  { %vm1242_vm7 = vcmp.gt.f32.partialorder %v1196_v25, 0.0  ;;  %v1274_v29 = vmul.f32 0.2, %v1196_v25  ;;  %v1304_v10 = vsel %vm1240_vm5, %v1192_v43, %v1272_v58 }
 0x1f7   :  { %vm1243_vm8 = vcmp.gt.f32.partialorder %v1198_v28, 0.0  ;;  %v1275_v30 = vmul.f32 0.2, %v1198_v28  ;;  %v1305_v9 = vsel %vm1241_vm6, %v1194_v23, %v1273_v26  ;;  %v1348_v27 = vmul.f32 %v2516_v4, %v1304_v10 }
 0x1f8   :  { %v1088_v33 = vpop.f32.mrb[56].mxu1  ;;  %v1349_v31 = vmul.f32 %v2519_v7, %v1305_v9  ;;  %v1306_v36 = vsel %vm1242_vm7, %v1196_v25, %v1274_v29 }
 0x1f9   :  { %v1201_v21 = vpop.f32.mrb[56].mxu0  ;;  %v1089_v19 = vadd.f32 %v1088_v33, %v2503_v39  ;;  %v1090_v34 = vpop.f32.mrb[57].mxu1  ;;  %v1307_v47 = vsel %vm1243_vm8, %v1198_v28, %v1275_v30  ;;  %v1350_v48 = vmul.f32 %v2516_v4, %v1306_v36 }
 0x1fa   :  { %v1203_v46 = vpop.f32.mrb[57].mxu0  ;;  %v1091_v22 = vadd.f32 %v1090_v34, %v2506_v44  ;;  %v1092_v51 = vpop.f32.mrb[58].mxu1  ;;  %v1390_v56 = vadd.f32 %v1349_v31, %v1348_v27  ;;  %v1351_v59 = vmul.f32 %v2519_v7, %v1307_v47  ;;  %v2581_v34 = vld [vmem:[#allocation2] ss:$0 sm:$0xff] }
 0x1fb   :  { %v1205_v54 = vpop.f32.mrb[58].mxu0  ;;  %v1202_v60 = vadd.f32 %v1201_v21, %v1089_v19  ;;  %v1093_v45 = vadd.f32 %v1092_v51, %v2503_v39  ;;  %v1094_v55 = vpop.f32.mrb[59].mxu1 }
 0x1fc   :  { %v1207_v32 = vpop.f32.mrb[59].mxu0  ;;  %v1204_v52 = vadd.f32 %v1203_v46, %v1091_v22  ;;  %v1095_v61 = vadd.f32 %v1094_v55, %v2506_v44  ;;  %1391 = vadd.xlane.f32.xlu0 %v1390_v56  ;;  %v1393_v62 = vadd.f32 %v1351_v59, %v1350_v48 }
 0x1fd   :  { %vm1244_vm9 = vcmp.gt.f32.partialorder %v1202_v60, 0.0  ;;  %v1276_v0 = vmul.f32 0.2, %v1202_v60  ;;  %v1206_v6 = vadd.f32 %v1205_v54, %v1093_v45 }
 0x1fe   :  { %vm1245_vm10 = vcmp.gt.f32.partialorder %v1204_v52, 0.0  ;;  %v1277_v49 = vmul.f32 0.2, %v1204_v52  ;;  %v1208_v2 = vadd.f32 %v1207_v32, %v1095_v61  ;;  %1394 = vadd.xlane.f32.xlu1 %v1393_v62 }
 0x1ff   :  { %vm1246_vm11 = vcmp.gt.f32.partialorder %v1206_v6, 0.0  ;;  %v1278_v37 = vmul.f32 0.2, %v1206_v6  ;;  %v1308_v53 = vsel %vm1244_vm9, %v1202_v60, %v1276_v0 }
 0x200   :  { %vm1247_vm12 = vcmp.gt.f32.partialorder %v1208_v2, 0.0  ;;  %v1279_v63 = vmul.f32 0.2, %v1208_v2  ;;  %v1098_v50 = vpop.f32.mrb[60].mxu1  ;;  %v1309_v8 = vsel %vm1245_vm10, %v1204_v52, %v1277_v49  ;;  %v1352_v35 = vmul.f32 %v2516_v4, %v1308_v53 }
 0x201   :  { %v1211_v3 = vpop.f32.mrb[60].mxu0  ;;  %v1099_v12 = vadd.f32 %v1098_v50, %v2503_v39  ;;  %v1100_v15 = vpop.f32.mrb[61].mxu1  ;;  %v1353_v38 = vmul.f32 %v2519_v7, %v1309_v8  ;;  %v1310_v13 = vsel %vm1246_vm11, %v1206_v6, %v1278_v37 }
 0x202   :  { %v1213_v16 = vpop.f32.mrb[61].mxu0  ;;  %v1101_v40 = vadd.f32 %v1100_v15, %v2506_v44  ;;  %v1102_v41 = vpop.f32.mrb[62].mxu1  ;;  %v1311_v5 = vsel %vm1247_vm12, %v1208_v2, %v1279_v63  ;;  %v1354_v17 = vmul.f32 %v2516_v4, %v1310_v13 }
 0x203   :  { %v1215_v14 = vpop.f32.mrb[62].mxu0  ;;  %v1212_v18 = vadd.f32 %v1211_v3, %v1099_v12  ;;  %v1103_v42 = vadd.f32 %v1102_v41, %v2503_v39  ;;  %v1104_v43 = vpop.f32.mrb[63].mxu1  ;;  %v1396_v1 = vadd.f32 %v1353_v38, %v1352_v35  ;;  %v1355_v11 = vmul.f32 %v2519_v7, %v1311_v5 }
 0x204   :  { %v1217_v20 = vpop.f32.mrb[63].mxu0  ;;  %v1214_v23 = vadd.f32 %v1213_v16, %v1101_v40  ;;  %v1105_v57 = vadd.f32 %v1104_v43, %v2506_v44 }
 0x205   :  { %vm1248_vm13 = vcmp.gt.f32.partialorder %v1212_v18, 0.0  ;;  %v1280_v24 = vmul.f32 0.2, %v1212_v18  ;;  %v1216_v58 = vadd.f32 %v1215_v14, %v1103_v42  ;;  %1397 = vadd.xlane.f32.xlu0 %v1396_v1  ;;  %v1399_v25 = vadd.f32 %v1355_v11, %v1354_v17 }
 0x206   :  { %vm1249_vm14 = vcmp.gt.f32.partialorder %v1214_v23, 0.0  ;;  %v1281_v26 = vmul.f32 0.2, %v1214_v23  ;;  %v1218_v28 = vadd.f32 %v1217_v20, %v1105_v57 }
 0x207   :  { %vm1250_vm15 = vcmp.gt.f32.partialorder %v1216_v58, 0.0  ;;  %v1282_v29 = vmul.f32 0.2, %v1216_v58  ;;  %1400 = vadd.xlane.f32.xlu1 %v1399_v25  ;;  %v1312_v39 = vsel %vm1248_vm13, %v1212_v18, %v1280_v24 }
 0x208   :  { %vm1251_vm0 = vcmp.gt.f32.partialorder %v1218_v28, 0.0  ;;  %v1283_v10 = vmul.f32 0.2, %v1218_v28  ;;  %v1313_v30 = vsel %vm1249_vm14, %v1214_v23, %v1281_v26  ;;  %v1356_v9 = vmul.f32 %v2516_v4, %v1312_v39 }
 0x209   :  { %v1357_v27 = vmul.f32 %v2519_v7, %v1313_v30  ;;  %v1314_v44 = vsel %vm1250_vm15, %v1216_v58, %v1282_v29 }
 0x20a   :  { %v1315_v33 = vsel %vm1251_vm0, %v1218_v28, %v1283_v10  ;;  %v1358_v21 = vmul.f32 %v2516_v4, %v1314_v44 }
 0x20b   :  { %v1402_v31 = vadd.f32 %v1357_v27, %v1356_v9  ;;  %v1359_v36 = vmul.f32 %v2519_v7, %v1315_v33 }
 0x20d   :  { %1403 = vadd.xlane.f32.xlu0 %v1402_v31  ;;  %v1405_v19 = vadd.f32 %v1359_v36, %v1358_v21 }
 0x20f   :  { %1406 = vadd.xlane.f32.xlu1 %v1405_v19 }
 0x25a   :  { %v1362_v46 = vpop.xlane.xlu0 %1361 }
 0x25b   :  { %v1415_v47 = vadd.f32 %v2581_v34, %v1362_v46 }
 0x25d   :  { %v1431_v48 = vsub.f32 0.0, %v1415_v47 }
 0x25e   :  { %v1365_v22 = vpop.xlane.xlu0 %1364 }
 0x25f   :  { %v1447_v51 = vmul.f32 1.442695, %v1431_v48  ;;  %v1416_v54 = vadd.f32 %v2581_v34, %v1365_v22 }
 0x261   :  { %1794 = vpow2.f32 %v1447_v51  ;;  %v1432_v56 = vsub.f32 0.0, %v1416_v54 }
 0x262   :  { %v1368_v59 = vpop.xlane.xlu1 %1367 }
 0x263   :  { %v1449_v4 = vmul.f32 1.442695, %v1432_v56  ;;  %v1417_v60 = vadd.f32 %v2581_v34, %v1368_v59 }
 0x265   :  { %1796 = vpow2.f32 %v1449_v4  ;;  %v1433_v7 = vsub.f32 0.0, %v1417_v60 }
 0x266   :  { %v1371_v45 = vpop.xlane.xlu1 %1370 }
 0x267   :  { %v1451_v55 = vmul.f32 1.442695, %v1433_v7  ;;  %v1418_v32 = vadd.f32 %v2581_v34, %v1371_v45 }
 0x269   :  { %1798 = vpow2.f32 %v1451_v55  ;;  %v1434_v52 = vsub.f32 0.0, %v1418_v32 }
 0x26b   :  { %v1795_v61 = vpop.eup %1794  ;;  %v1453_v62 = vmul.f32 1.442695, %v1434_v52  ;;  %v1374_v6 = vpop.xlane.xlu0 %1373 }
 0x26c   :  { %v1479_v0 = vadd.f32 1.0, %v1795_v61  ;;  %v1419_v49 = vadd.f32 %v2581_v34, %v1374_v6 }
 0x26d   :  { %1800 = vpow2.f32 %v1453_v62  ;;  %v1377_v37 = vpop.xlane.xlu1 %1376 }
 0x26e   :  { %1802 = vrcp.f32 %v1479_v0  ;;  %v1435_v63 = vsub.f32 0.0, %v1419_v49  ;;  %v1420_v50 = vadd.f32 %v2581_v34, %v1377_v37 }
 0x26f   :  { %v1797_v2 = vpop.eup %1796 }
 0x270   :  { %v1480_v53 = vadd.f32 1.0, %v1797_v2  ;;  %v1455_v3 = vmul.f32 1.442695, %v1435_v63  ;;  %v1436_v8 = vsub.f32 0.0, %v1420_v50 }
 0x272   :  { %1804 = vrcp.f32 %v1480_v53  ;;  %v1457_v15 = vmul.f32 1.442695, %v1436_v8 }
 0x273   :  { %v1799_v35 = vpop.eup %1798  ;;  %1806 = vpow2.f32 %v1455_v3 }
 0x274   :  { %v1481_v12 = vadd.f32 1.0, %v1799_v35 }
 0x275   :  { %v1380_v38 = vpop.xlane.xlu0 %1379 }
 0x276   :  { %1808 = vrcp.f32 %v1481_v12  ;;  %v1421_v41 = vadd.f32 %v2581_v34, %v1380_v38 }
 0x277   :  { %v1801_v16 = vpop.eup %1800  ;;  %1810 = vpow2.f32 %v1457_v15  ;;  %v1383_v14 = vpop.xlane.xlu1 %1382 }
 0x278   :  { %v1803_v13 = vpop.eup %1802  ;;  %v1482_v40 = vadd.f32 1.0, %v1801_v16  ;;  %v1437_v5 = vsub.f32 0.0, %v1421_v41  ;;  %v1422_v17 = vadd.f32 %v2581_v34, %v1383_v14 }
 0x279   :  { %1512 = vst.msk [vmem:[%s2670_s7] sm:$0xff] %vm1511_vm1, %v1803_v13 }
 0x27a   :  { %1812 = vrcp.f32 %v1482_v40  ;;  %v1459_v42 = vmul.f32 1.442695, %v1437_v5  ;;  %v1438_v43 = vsub.f32 0.0, %v1422_v17 }
 0x27c   :  { %v1805_v18 = vpop.eup %1804  ;;  %1814 = vpow2.f32 %v1459_v42  ;;  %v1461_v1 = vmul.f32 1.442695, %v1438_v43 }
 0x27d   :  { %1513 = vst.msk [vmem:[%s2670_s7 + $0x8] sm:$0xff] %vm1511_vm1, %v1805_v18  ;;  %v1807_v20 = vpop.eup %1806 }
 0x27e   :  { %v1483_v11 = vadd.f32 1.0, %v1807_v20  ;;  %1816 = vpow2.f32 %v1461_v1 }
 0x27f   :  { %v1386_v57 = vpop.xlane.xlu0 %1385 }
 0x280   :  { %v1809_v23 = vpop.eup %1808  ;;  %1818 = vrcp.f32 %v1483_v11  ;;  %v1423_v58 = vadd.f32 %v2581_v34, %v1386_v57 }
 0x281   :  { %v1811_v24 = vpop.eup %1810  ;;  %1514 = vst.msk [vmem:[%s2670_s7 + $0x10] sm:$0xff] %vm1511_vm1, %v1809_v23  ;;  %v1389_v26 = vpop.xlane.xlu1 %1388 }
 0x282   :  { %v1484_v25 = vadd.f32 1.0, %v1811_v24  ;;  %v1439_v28 = vsub.f32 0.0, %v1423_v58  ;;  %v1424_v29 = vadd.f32 %v2581_v34, %v1389_v26 }
 0x284   :  { %v1813_v39 = vpop.eup %1812  ;;  %1820 = vrcp.f32 %v1484_v25  ;;  %v1463_v10 = vmul.f32 1.442695, %v1439_v28  ;;  %v1440_v30 = vsub.f32 0.0, %v1424_v29 }
 0x285   :  { %1515 = vst.msk [vmem:[%s2670_s7 + $0x18] sm:$0xff] %vm1511_vm1, %v1813_v39 }
 0x286   :  { %1822 = vpow2.f32 %v1463_v10  ;;  %v1465_v9 = vmul.f32 1.442695, %v1440_v30  ;;  %v1815_v27 = vpop.eup %1814 }
 0x287   :  { %v1485_v44 = vadd.f32 1.0, %v1815_v27 }
 0x288   :  { %1824 = vpow2.f32 %v1465_v9  ;;  %v1817_v21 = vpop.eup %1816 }
 0x289   :  { %v1392_v33 = vpop.xlane.xlu0 %1391  ;;  %1826 = vrcp.f32 %v1485_v44  ;;  %v1486_v19 = vadd.f32 1.0, %v1817_v21 }
 0x28a   :  { %v1425_v31 = vadd.f32 %v2581_v34, %v1392_v33  ;;  %v1819_v36 = vpop.eup %1818 }
 0x28b   :  { %v1395_v46 = vpop.xlane.xlu1 %1394  ;;  %1516 = vst.msk [vmem:[%s2670_s7 + $0x20] sm:$0xff] %vm1511_vm1, %v1819_v36  ;;  %1828 = vrcp.f32 %v1486_v19 }
 0x28c   :  { %v1441_v47 = vsub.f32 0.0, %v1425_v31  ;;  %v1426_v48 = vadd.f32 %v2581_v34, %v1395_v46 }
 0x28e   :  { %v1821_v22 = vpop.eup %1820  ;;  %v1467_v51 = vmul.f32 1.442695, %v1441_v47  ;;  %v1442_v54 = vsub.f32 0.0, %v1426_v48 }
 0x28f   :  { %1517 = vst.msk [vmem:[%s2670_s7 + $0x28] sm:$0xff] %vm1511_vm1, %v1821_v22 }
 0x290   :  { %1830 = vpow2.f32 %v1467_v51  ;;  %v1469_v56 = vmul.f32 1.442695, %v1442_v54  ;;  %v1823_v59 = vpop.eup %1822 }
 0x291   :  { %v1487_v4 = vadd.f32 1.0, %v1823_v59 }
 0x292   :  { %1832 = vpow2.f32 %v1469_v56  ;;  %v1398_v60 = vpop.xlane.xlu0 %1397  ;;  %v1825_v7 = vpop.eup %1824 }
 0x293   :  { %v1427_v45 = vadd.f32 %v2581_v34, %v1398_v60  ;;  %1834 = vrcp.f32 %v1487_v4  ;;  %v1488_v55 = vadd.f32 1.0, %v1825_v7  ;;  %v1827_v52 = vpop.eup %1826 }
 0x294   :  { %v1401_v32 = vpop.xlane.xlu1 %1400  ;;  %1518 = vst.msk [vmem:[%s2670_s7 + $0x30] sm:$0xff] %vm1511_vm1, %v1827_v52 }
 0x295   :  { %v1443_v61 = vsub.f32 0.0, %v1427_v45  ;;  %v1428_v62 = vadd.f32 %v2581_v34, %v1401_v32  ;;  %1836 = vrcp.f32 %v1488_v55  ;;  %v1829_v0 = vpop.eup %1828 }
 0x296   :  { %1519 = vst.msk [vmem:[%s2670_s7 + $0x38] sm:$0xff] %vm1511_vm1, %v1829_v0 }
 0x297   :  { %v1471_v6 = vmul.f32 1.442695, %v1443_v61  ;;  %v1444_v49 = vsub.f32 0.0, %v1428_v62 }
 0x299   :  { %1838 = vpow2.f32 %v1471_v6  ;;  %v1473_v2 = vmul.f32 1.442695, %v1444_v49 }
 0x29a   :  { %v1831_v37 = vpop.eup %1830  ;;  %v1404_v53 = vpop.xlane.xlu0 %1403 }
 0x29b   :  { %v1489_v63 = vadd.f32 1.0, %v1831_v37  ;;  %1840 = vpow2.f32 %v1473_v2  ;;  %v1429_v50 = vadd.f32 %v2581_v34, %v1404_v53 }
 0x29c   :  { %v1833_v3 = vpop.eup %1832  ;;  %v1407_v8 = vpop.xlane.xlu1 %1406 }
 0x29d   :  { %1842 = vrcp.f32 %v1489_v63  ;;  %v1490_v35 = vadd.f32 1.0, %v1833_v3  ;;  %v1445_v12 = vsub.f32 0.0, %v1429_v50  ;;  %v1430_v15 = vadd.f32 %v2581_v34, %v1407_v8  ;;  %v1835_v16 = vpop.eup %1834 }
 0x29e   :  { %1520 = vst.msk [vmem:[%s2670_s7 + $0x40] sm:$0xff] %vm1511_vm1, %v1835_v16 }
 0x29f   :  { %1844 = vrcp.f32 %v1490_v35  ;;  %v1475_v38 = vmul.f32 1.442695, %v1445_v12  ;;  %v1446_v13 = vsub.f32 0.0, %v1430_v15  ;;  %v1837_v40 = vpop.eup %1836 }
 0x2a0   :  { %1521 = vst.msk [vmem:[%s2670_s7 + $0x48] sm:$0xff] %vm1511_vm1, %v1837_v40 }
 0x2a1   :  { %1846 = vpow2.f32 %v1475_v38  ;;  %v1477_v41 = vmul.f32 1.442695, %v1446_v13 }
 0x2a3   :  { %v1839_v14 = vpop.eup %1838  ;;  %1848 = vpow2.f32 %v1477_v41 }
 0x2a4   :  { %v1491_v34 = vadd.f32 1.0, %v1839_v14 }
 0x2a5   :  { %v1841_v5 = vpop.eup %1840 }
 0x2a6   :  { %1850 = vrcp.f32 %v1491_v34  ;;  %v1492_v17 = vadd.f32 1.0, %v1841_v5 }
 0x2a7   :  { %v1843_v18 = vpop.eup %1842 }
 0x2a8   :  { %1522 = vst.msk [vmem:[%s2670_s7 + $0x50] sm:$0xff] %vm1511_vm1, %v1843_v18  ;;  %1852 = vrcp.f32 %v1492_v17 }
 0x2a9   :  { %v1845_v42 = vpop.eup %1844 }
 0x2aa   :  { %1523 = vst.msk [vmem:[%s2670_s7 + $0x58] sm:$0xff] %vm1511_vm1, %v1845_v42 }
 0x2ab   :  { %v1847_v43 = vpop.eup %1846 }
 0x2ac   :  { %v1493_v20 = vadd.f32 1.0, %v1847_v43 }
 0x2ad   :  { %v1849_v1 = vpop.eup %1848 }
 0x2ae   :  { %1854 = vrcp.f32 %v1493_v20  ;;  %v1494_v11 = vadd.f32 1.0, %v1849_v1 }
 0x2b0   :  { %v1851_v23 = vpop.eup %1850  ;;  %1856 = vrcp.f32 %v1494_v11 }
 0x2b1   :  { %1524 = vst.msk [vmem:[%s2670_s7 + $0x60] sm:$0xff] %vm1511_vm1, %v1851_v23 }
 0x2b2   :  { %v1853_v57 = vpop.eup %1852 }
 0x2b3   :  { %1525 = vst.msk [vmem:[%s2670_s7 + $0x68] sm:$0xff] %vm1511_vm1, %v1853_v57 }
 0x2b8   :  { %v1855_v24 = vpop.eup %1854 }
 0x2b9   :  { %1526 = vst.msk [vmem:[%s2670_s7 + $0x70] sm:$0xff] %vm1511_vm1, %v1855_v24 }
 0x2ba   :  { %v1857_v58 = vpop.eup %1856 }
 0x2bb   :  { %1527 = vst.msk [vmem:[%s2670_s7 + $0x78] sm:$0xff] %vm1511_vm1, %v1857_v58 }

</bundles_post_ra>
